<compile_context>
chip_gen: v5e
topology: v5e:2x2
jax: 0.10.0
libtpu: 0.0.40
codegen_flags: <defaults>
</compile_context>

<pallas_src>
import functools

import jax
import jax.numpy as jnp
import numpy as np
from jax import lax
from jax.experimental import pallas as pl
from jax.experimental.pallas import tpu as pltpu  # noqa: F401  (kept for parity)


# -----------------------------------------------------------------------------
# Pallas kernel (single invocation, layer-sequential LSTM, time loop unrolled)
# -----------------------------------------------------------------------------
def _actor_kernel(num_layers, hidden_size, seq_len, num_classes, matmul_dtype,
                  *refs):
    """refs layout:
      x_ref                           (T*Bp, I)   flat time-major, batch padded
      [w_ih_l (in_l,4H), w_hh_l (H,4H), b_l (1,4H)] * L
      w_fc, b_fc                      (H, Cp), (1, Cp)
      out_ref                         (Bp, Cp)    log-probs (padded lanes junk)
    """
    H = hidden_size
    T = seq_len

    x_ref = refs[0]
    layer_refs = refs[1:1 + 3 * num_layers]
    w_fc_ref, b_fc_ref, out_ref = refs[1 + 3 * num_layers:]

    Bp = x_ref.shape[0] // T

    seq_in = x_ref[...].astype(matmul_dtype)             # (T*Bp, in_0)
    h = None
    for l in range(num_layers):
        w_ih = layer_refs[3 * l][...]                    # (in_l, 4H)
        w_hh = layer_refs[3 * l + 1][...]                # (H, 4H)
        b = layer_refs[3 * l + 2][...]                   # (1, 4H) f32

        # One big MXU matmul for the input projection across all timesteps;
        # summed biases folded in once (broadcast emitted once per layer).
        gates_x = jnp.dot(seq_in, w_ih, preferred_element_type=jnp.float32)
        gates_x = gates_x + b                            # (T*Bp, 4H)

        h = jnp.zeros((Bp, H), jnp.float32)
        c = jnp.zeros((Bp, H), jnp.float32)
        hs = []
        for t in range(T):                               # static, fully unrolled
            # Small recurrent matmul only; input-gate slice is a static,
            # sublane-tile-aligned row slice.
            gates = gates_x[t * Bp:(t + 1) * Bp, :] + jnp.dot(
                h.astype(matmul_dtype), w_hh,
                preferred_element_type=jnp.float32)      # (Bp, 4H)
            # Two transcendental pushes over the full gates tile, then lane
            # slices (PyTorch gate order i, f, g, o).
            sig = jax.nn.sigmoid(gates)
            tah = jnp.tanh(gates)
            i = sig[:, 0 * H:1 * H]
            f = sig[:, 1 * H:2 * H]
            g = tah[:, 2 * H:3 * H]
            o = sig[:, 3 * H:4 * H]
            c = f * c + i * g
            h = o * jnp.tanh(c)
            if l + 1 < num_layers:
                hs.append(h)
        if l + 1 < num_layers:
            # Sequence of hidden states feeds the next layer's big matmul.
            seq_in = jnp.concatenate(hs, axis=0).astype(matmul_dtype)  # (T*Bp,H)

    last = h                                             # (Bp, H), t = T-1

    # Final linear + numerically-stable log_softmax over the real classes only.
    logits = (jnp.dot(last, w_fc_ref[...], preferred_element_type=jnp.float32)
              + b_fc_ref[...])                           # (Bp, Cp)
    lane = lax.broadcasted_iota(jnp.int32, logits.shape, 1)
    logits = jnp.where(lane < num_classes, logits, jnp.float32(-1e30))
    m = jnp.max(logits, axis=-1, keepdims=True)
    z = logits - m
    lse = jnp.log(jnp.sum(jnp.exp(z), axis=-1, keepdims=True))
    out_ref[...] = (z - lse).astype(out_ref.dtype)


# -----------------------------------------------------------------------------
# Wrapper
# -----------------------------------------------------------------------------
def _round_up(x, m):
    return (x + m - 1) // m * m


def actor_forward(x, params, *, num_layers, hidden_size, num_classes,
                  matmul_dtype=jnp.float32):
    """x: (B, T, I) batch-first float32.  Returns (B, num_classes) log-probs."""
    B, T, I = x.shape
    H, C = hidden_size, num_classes
    Bp = _round_up(B, 8)        # sublane-dense batch
    Cp = _round_up(C, 128)      # lane-dense output (unmasked vst)

    # Time-major, zero-pad batch rows, flatten to (T*Bp, I) so the kernel's
    # per-layer input projection is one big matmul with no in-kernel reshape.
    x_tm = jnp.transpose(x, (1, 0, 2))                          # (T, B, I)
    x_tm = jnp.pad(x_tm, ((0, 0), (0, Bp - B), (0, 0)))
    x_flat = x_tm.reshape(T * Bp, I).astype(matmul_dtype)

    operands = [x_flat]
    for l in range(num_layers):
        w_ih, w_hh, b_ih, b_hh = params["lstm"][l]
        operands += [w_ih.T.astype(matmul_dtype),               # (in_l, 4H)
                     w_hh.T.astype(matmul_dtype),               # (H, 4H)
                     (b_ih + b_hh).reshape(1, 4 * H).astype(jnp.float32)]

    w_fc, b_fc = params["fc"]
    w_fc_p = jnp.pad(w_fc.T, ((0, 0), (0, Cp - C)))             # (H, Cp)
    b_fc_p = jnp.pad(b_fc.reshape(1, C), ((0, 0), (0, Cp - C)))  # (1, Cp)
    operands += [w_fc_p.astype(jnp.float32), b_fc_p.astype(jnp.float32)]

    kernel = functools.partial(_actor_kernel, num_layers, H, T, C, matmul_dtype)

    out = pl.pallas_call(
        kernel,
        out_shape=jax.ShapeDtypeStruct((Bp, Cp), jnp.float32),
    )(*operands)
    return out[:B, :C]


# -----------------------------------------------------------------------------
# Deterministic parameter init (PyTorch-style uniform(-1/sqrt(H), 1/sqrt(H)))
# -----------------------------------------------------------------------------
def init_params(key, input_size, hidden_size, num_layers, num_classes):
    H = hidden_size
    k_lstm = 1.0 / np.sqrt(H)
    params = {"lstm": []}
    for l in range(num_layers):
        in_l = input_size if l == 0 else H
        key, k1, k2, k3, k4 = jax.random.split(key, 5)
        w_ih = jax.random.uniform(k1, (4 * H, in_l), jnp.float32, -k_lstm, k_lstm)
        w_hh = jax.random.uniform(k2, (4 * H, H), jnp.float32, -k_lstm, k_lstm)
        b_ih = jax.random.uniform(k3, (4 * H,), jnp.float32, -k_lstm, k_lstm)
        b_hh = jax.random.uniform(k4, (4 * H,), jnp.float32, -k_lstm, k_lstm)
        params["lstm"].append((w_ih, w_hh, b_ih, b_hh))
    k_fc = 1.0 / np.sqrt(H)
    key, k1, k2 = jax.random.split(key, 3)
    w_fc = jax.random.uniform(k1, (num_classes, H), jnp.float32, -k_fc, k_fc)
    b_fc = jax.random.uniform(k2, (num_classes,), jnp.float32, -k_fc, k_fc)
    params["fc"] = (w_fc, b_fc)
    return params


# -----------------------------------------------------------------------------
# Pure-JAX reference (eval-mode nn.LSTM + Linear + log_softmax)
# -----------------------------------------------------------------------------
def actor_reference(x, params, *, num_layers, hidden_size):
    B, T, I = x.shape
    H = hidden_size
    h = [jnp.zeros((B, H), jnp.float32) for _ in range(num_layers)]
    c = [jnp.zeros((B, H), jnp.float32) for _ in range(num_layers)]
    last = None
    for t in range(T):
        inp = x[:, t, :]
        for l in range(num_layers):
            w_ih, w_hh, b_ih, b_hh = params["lstm"][l]
            gates = inp @ w_ih.T + h[l] @ w_hh.T + b_ih + b_hh
            i_g = jax.nn.sigmoid(gates[:, 0 * H:1 * H])
            f_g = jax.nn.sigmoid(gates[:, 1 * H:2 * H])
            g_g = jnp.tanh(gates[:, 2 * H:3 * H])
            o_g = jax.nn.sigmoid(gates[:, 3 * H:4 * H])
            c[l] = f_g * c[l] + i_g * g_g
            h[l] = o_g * jnp.tanh(c[l])
            inp = h[l]
        last = inp
    w_fc, b_fc = params["fc"]
    logits = last @ w_fc.T + b_fc
    return jax.nn.log_softmax(logits, axis=1)


# -----------------------------------------------------------------------------
# Main
# -----------------------------------------------------------------------------
if __name__ == "__main__":
    # Small shapes consistent with the module's forward.
    B, T, I = 4, 8, 16          # batch, seq_len, input_size
    H, L, C = 32, 2, 8          # hidden_size, num_layers, num_classes

    key = jax.random.PRNGKey(0)
    key, kx, kp = jax.random.split(key, 3)
    x = jax.random.normal(kx, (B, T, I), dtype=jnp.float32)
    params = init_params(kp, I, H, L, C)

    ref = actor_reference(x, params, num_layers=L, hidden_size=H)

    # f32 matmul path (all generations) -- bitwise-close to the reference.
    out = actor_forward(x, params, num_layers=L, hidden_size=H, num_classes=C)
    out = jax.block_until_ready(out)
    np.testing.assert_allclose(np.asarray(out), np.asarray(ref),
                               rtol=1e-5, atol=1e-5)
    assert out.shape == (B, C)

    # bf16 MXU operands (v6e/v7x-friendly); f32 state/accumulation, loose check.
    out_bf16 = actor_forward(x, params, num_layers=L, hidden_size=H,
                             num_classes=C, matmul_dtype=jnp.bfloat16)
    out_bf16 = jax.block_until_ready(out_bf16)
    np.testing.assert_allclose(np.asarray(out_bf16), np.asarray(ref),
                               rtol=1e-1, atol=1e-1)

    print("KERNEL_OK")
</pallas_src>

<mosaic_0001>
module attributes {stable_mosaic.version = 11 : i64} {
  func.func @_actor_kernel(%arg0: memref<64x16xf32, #tpu.memory_space<vmem>>, %arg1: memref<16x128xf32, #tpu.memory_space<vmem>>, %arg2: memref<32x128xf32, #tpu.memory_space<vmem>>, %arg3: memref<1x128xf32, #tpu.memory_space<vmem>>, %arg4: memref<32x128xf32, #tpu.memory_space<vmem>>, %arg5: memref<32x128xf32, #tpu.memory_space<vmem>>, %arg6: memref<1x128xf32, #tpu.memory_space<vmem>>, %arg7: memref<32x128xf32, #tpu.memory_space<vmem>>, %arg8: memref<1x128xf32, #tpu.memory_space<vmem>>, %arg9: memref<8x128xf32, #tpu.memory_space<vmem>>) attributes {dimension_semantics = [], scalar_prefetch = 0 : i64, scratch_operands = 0 : i64, tpu.core_type = #tpu.core_type<tc>} {
    %c0 = arith.constant 0 : index
    %c0_0 = arith.constant 0 : index
    %0 = vector.load %arg0[%c0, %c0_0] : memref<64x16xf32, #tpu.memory_space<vmem>>, vector<64x16xf32>
    %c0_1 = arith.constant 0 : index
    %c0_2 = arith.constant 0 : index
    %1 = vector.load %arg1[%c0_1, %c0_2] : memref<16x128xf32, #tpu.memory_space<vmem>>, vector<16x128xf32>
    %c0_3 = arith.constant 0 : index
    %c0_4 = arith.constant 0 : index
    %2 = vector.load %arg2[%c0_3, %c0_4] : memref<32x128xf32, #tpu.memory_space<vmem>>, vector<32x128xf32>
    %c0_5 = arith.constant 0 : index
    %c0_6 = arith.constant 0 : index
    %3 = vector.load %arg3[%c0_5, %c0_6] : memref<1x128xf32, #tpu.memory_space<vmem>>, vector<1x128xf32>
    %cst = arith.constant dense<0.000000e+00> : vector<64x128xf32>
    %4 = tpu.matmul %0, %1, %cst {dimension_numbers = #tpu.dot_dimension_numbers<[1], [0], [0], [1], [0, 0, 1, 1], [], []>} : vector<64x16xf32>, vector<16x128xf32>, vector<64x128xf32> -> vector<64x128xf32>
    %5 = vector.broadcast %3 : vector<1x128xf32> to vector<64x128xf32>
    %6 = arith.addf %4, %5 : vector<64x128xf32>
    %cst_7 = arith.constant 0.000000e+00 : f32
    %7 = vector.broadcast %cst_7 : f32 to vector<8x32xf32>
    %cst_8 = arith.constant 0.000000e+00 : f32
    %8 = vector.broadcast %cst_8 : f32 to vector<8x32xf32>
    %9 = vector.extract_strided_slice %6 {offsets = [0, 0], sizes = [8, 128], strides = [1, 1]} : vector<64x128xf32> to vector<8x128xf32>
    %cst_9 = arith.constant dense<0.000000e+00> : vector<8x128xf32>
    %10 = tpu.matmul %7, %2, %cst_9 {dimension_numbers = #tpu.dot_dimension_numbers<[1], [0], [0], [1], [0, 0, 1, 1], [], []>} : vector<8x32xf32>, vector<32x128xf32>, vector<8x128xf32> -> vector<8x128xf32>
    %11 = arith.addf %9, %10 : vector<8x128xf32>
    %12 = arith.negf %11 : vector<8x128xf32>
    %13 = math.exp %12 : vector<8x128xf32>
    %cst_10 = arith.constant 1.000000e+00 : f32
    %14 = vector.broadcast %cst_10 : f32 to vector<8x128xf32>
    %15 = arith.addf %14, %13 : vector<8x128xf32>
    %16 = arith.divf %14, %15 : vector<8x128xf32>
    %17 = math.tanh %11 : vector<8x128xf32>
    %18 = vector.extract_strided_slice %16 {offsets = [0, 0], sizes = [8, 32], strides = [1, 1]} : vector<8x128xf32> to vector<8x32xf32>
    %19 = vector.extract_strided_slice %16 {offsets = [0, 32], sizes = [8, 32], strides = [1, 1]} : vector<8x128xf32> to vector<8x32xf32>
    %20 = vector.extract_strided_slice %17 {offsets = [0, 64], sizes = [8, 32], strides = [1, 1]} : vector<8x128xf32> to vector<8x32xf32>
    %21 = vector.extract_strided_slice %16 {offsets = [0, 96], sizes = [8, 32], strides = [1, 1]} : vector<8x128xf32> to vector<8x32xf32>
    %22 = arith.mulf %19, %8 : vector<8x32xf32>
    %23 = arith.mulf %18, %20 : vector<8x32xf32>
    %24 = arith.addf %22, %23 : vector<8x32xf32>
    %25 = math.tanh %24 : vector<8x32xf32>
    %26 = arith.mulf %21, %25 : vector<8x32xf32>
    %27 = vector.extract_strided_slice %6 {offsets = [8, 0], sizes = [8, 128], strides = [1, 1]} : vector<64x128xf32> to vector<8x128xf32>
    %cst_11 = arith.constant dense<0.000000e+00> : vector<8x128xf32>
    %28 = tpu.matmul %26, %2, %cst_11 {dimension_numbers = #tpu.dot_dimension_numbers<[1], [0], [0], [1], [0, 0, 1, 1], [], []>} : vector<8x32xf32>, vector<32x128xf32>, vector<8x128xf32> -> vector<8x128xf32>
    %29 = arith.addf %27, %28 : vector<8x128xf32>
    %30 = arith.negf %29 : vector<8x128xf32>
    %31 = math.exp %30 : vector<8x128xf32>
    %cst_12 = arith.constant 1.000000e+00 : f32
    %32 = vector.broadcast %cst_12 : f32 to vector<8x128xf32>
    %33 = arith.addf %32, %31 : vector<8x128xf32>
    %34 = arith.divf %32, %33 : vector<8x128xf32>
    %35 = math.tanh %29 : vector<8x128xf32>
    %36 = vector.extract_strided_slice %34 {offsets = [0, 0], sizes = [8, 32], strides = [1, 1]} : vector<8x128xf32> to vector<8x32xf32>
    %37 = vector.extract_strided_slice %34 {offsets = [0, 32], sizes = [8, 32], strides = [1, 1]} : vector<8x128xf32> to vector<8x32xf32>
    %38 = vector.extract_strided_slice %35 {offsets = [0, 64], sizes = [8, 32], strides = [1, 1]} : vector<8x128xf32> to vector<8x32xf32>
    %39 = vector.extract_strided_slice %34 {offsets = [0, 96], sizes = [8, 32], strides = [1, 1]} : vector<8x128xf32> to vector<8x32xf32>
    %40 = arith.mulf %37, %24 : vector<8x32xf32>
    %41 = arith.mulf %36, %38 : vector<8x32xf32>
    %42 = arith.addf %40, %41 : vector<8x32xf32>
    %43 = math.tanh %42 : vector<8x32xf32>
    %44 = arith.mulf %39, %43 : vector<8x32xf32>
    %45 = vector.extract_strided_slice %6 {offsets = [16, 0], sizes = [8, 128], strides = [1, 1]} : vector<64x128xf32> to vector<8x128xf32>
    %cst_13 = arith.constant dense<0.000000e+00> : vector<8x128xf32>
    %46 = tpu.matmul %44, %2, %cst_13 {dimension_numbers = #tpu.dot_dimension_numbers<[1], [0], [0], [1], [0, 0, 1, 1], [], []>} : vector<8x32xf32>, vector<32x128xf32>, vector<8x128xf32> -> vector<8x128xf32>
    %47 = arith.addf %45, %46 : vector<8x128xf32>
    %48 = arith.negf %47 : vector<8x128xf32>
    %49 = math.exp %48 : vector<8x128xf32>
    %cst_14 = arith.constant 1.000000e+00 : f32
    %50 = vector.broadcast %cst_14 : f32 to vector<8x128xf32>
    %51 = arith.addf %50, %49 : vector<8x128xf32>
    %52 = arith.divf %50, %51 : vector<8x128xf32>
    %53 = math.tanh %47 : vector<8x128xf32>
    %54 = vector.extract_strided_slice %52 {offsets = [0, 0], sizes = [8, 32], strides = [1, 1]} : vector<8x128xf32> to vector<8x32xf32>
    %55 = vector.extract_strided_slice %52 {offsets = [0, 32], sizes = [8, 32], strides = [1, 1]} : vector<8x128xf32> to vector<8x32xf32>
    %56 = vector.extract_strided_slice %53 {offsets = [0, 64], sizes = [8, 32], strides = [1, 1]} : vector<8x128xf32> to vector<8x32xf32>
    %57 = vector.extract_strided_slice %52 {offsets = [0, 96], sizes = [8, 32], strides = [1, 1]} : vector<8x128xf32> to vector<8x32xf32>
    %58 = arith.mulf %55, %42 : vector<8x32xf32>
    %59 = arith.mulf %54, %56 : vector<8x32xf32>
    %60 = arith.addf %58, %59 : vector<8x32xf32>
    %61 = math.tanh %60 : vector<8x32xf32>
    %62 = arith.mulf %57, %61 : vector<8x32xf32>
    %63 = vector.extract_strided_slice %6 {offsets = [24, 0], sizes = [8, 128], strides = [1, 1]} : vector<64x128xf32> to vector<8x128xf32>
    %cst_15 = arith.constant dense<0.000000e+00> : vector<8x128xf32>
    %64 = tpu.matmul %62, %2, %cst_15 {dimension_numbers = #tpu.dot_dimension_numbers<[1], [0], [0], [1], [0, 0, 1, 1], [], []>} : vector<8x32xf32>, vector<32x128xf32>, vector<8x128xf32> -> vector<8x128xf32>
    %65 = arith.addf %63, %64 : vector<8x128xf32>
    %66 = arith.negf %65 : vector<8x128xf32>
    %67 = math.exp %66 : vector<8x128xf32>
    %cst_16 = arith.constant 1.000000e+00 : f32
    %68 = vector.broadcast %cst_16 : f32 to vector<8x128xf32>
    %69 = arith.addf %68, %67 : vector<8x128xf32>
    %70 = arith.divf %68, %69 : vector<8x128xf32>
    %71 = math.tanh %65 : vector<8x128xf32>
    %72 = vector.extract_strided_slice %70 {offsets = [0, 0], sizes = [8, 32], strides = [1, 1]} : vector<8x128xf32> to vector<8x32xf32>
    %73 = vector.extract_strided_slice %70 {offsets = [0, 32], sizes = [8, 32], strides = [1, 1]} : vector<8x128xf32> to vector<8x32xf32>
    %74 = vector.extract_strided_slice %71 {offsets = [0, 64], sizes = [8, 32], strides = [1, 1]} : vector<8x128xf32> to vector<8x32xf32>
    %75 = vector.extract_strided_slice %70 {offsets = [0, 96], sizes = [8, 32], strides = [1, 1]} : vector<8x128xf32> to vector<8x32xf32>
    %76 = arith.mulf %73, %60 : vector<8x32xf32>
    %77 = arith.mulf %72, %74 : vector<8x32xf32>
    %78 = arith.addf %76, %77 : vector<8x32xf32>
    %79 = math.tanh %78 : vector<8x32xf32>
    %80 = arith.mulf %75, %79 : vector<8x32xf32>
    %81 = vector.extract_strided_slice %6 {offsets = [32, 0], sizes = [8, 128], strides = [1, 1]} : vector<64x128xf32> to vector<8x128xf32>
    %cst_17 = arith.constant dense<0.000000e+00> : vector<8x128xf32>
    %82 = tpu.matmul %80, %2, %cst_17 {dimension_numbers = #tpu.dot_dimension_numbers<[1], [0], [0], [1], [0, 0, 1, 1], [], []>} : vector<8x32xf32>, vector<32x128xf32>, vector<8x128xf32> -> vector<8x128xf32>
    %83 = arith.addf %81, %82 : vector<8x128xf32>
    %84 = arith.negf %83 : vector<8x128xf32>
    %85 = math.exp %84 : vector<8x128xf32>
    %cst_18 = arith.constant 1.000000e+00 : f32
    %86 = vector.broadcast %cst_18 : f32 to vector<8x128xf32>
    %87 = arith.addf %86, %85 : vector<8x128xf32>
    %88 = arith.divf %86, %87 : vector<8x128xf32>
    %89 = math.tanh %83 : vector<8x128xf32>
    %90 = vector.extract_strided_slice %88 {offsets = [0, 0], sizes = [8, 32], strides = [1, 1]} : vector<8x128xf32> to vector<8x32xf32>
    %91 = vector.extract_strided_slice %88 {offsets = [0, 32], sizes = [8, 32], strides = [1, 1]} : vector<8x128xf32> to vector<8x32xf32>
    %92 = vector.extract_strided_slice %89 {offsets = [0, 64], sizes = [8, 32], strides = [1, 1]} : vector<8x128xf32> to vector<8x32xf32>
    %93 = vector.extract_strided_slice %88 {offsets = [0, 96], sizes = [8, 32], strides = [1, 1]} : vector<8x128xf32> to vector<8x32xf32>
    %94 = arith.mulf %91, %78 : vector<8x32xf32>
    %95 = arith.mulf %90, %92 : vector<8x32xf32>
    %96 = arith.addf %94, %95 : vector<8x32xf32>
    %97 = math.tanh %96 : vector<8x32xf32>
    %98 = arith.mulf %93, %97 : vector<8x32xf32>
    %99 = vector.extract_strided_slice %6 {offsets = [40, 0], sizes = [8, 128], strides = [1, 1]} : vector<64x128xf32> to vector<8x128xf32>
    %cst_19 = arith.constant dense<0.000000e+00> : vector<8x128xf32>
    %100 = tpu.matmul %98, %2, %cst_19 {dimension_numbers = #tpu.dot_dimension_numbers<[1], [0], [0], [1], [0, 0, 1, 1], [], []>} : vector<8x32xf32>, vector<32x128xf32>, vector<8x128xf32> -> vector<8x128xf32>
    %101 = arith.addf %99, %100 : vector<8x128xf32>
    %102 = arith.negf %101 : vector<8x128xf32>
    %103 = math.exp %102 : vector<8x128xf32>
    %cst_20 = arith.constant 1.000000e+00 : f32
    %104 = vector.broadcast %cst_20 : f32 to vector<8x128xf32>
    %105 = arith.addf %104, %103 : vector<8x128xf32>
    %106 = arith.divf %104, %105 : vector<8x128xf32>
    %107 = math.tanh %101 : vector<8x128xf32>
    %108 = vector.extract_strided_slice %106 {offsets = [0, 0], sizes = [8, 32], strides = [1, 1]} : vector<8x128xf32> to vector<8x32xf32>
    %109 = vector.extract_strided_slice %106 {offsets = [0, 32], sizes = [8, 32], strides = [1, 1]} : vector<8x128xf32> to vector<8x32xf32>
    %110 = vector.extract_strided_slice %107 {offsets = [0, 64], sizes = [8, 32], strides = [1, 1]} : vector<8x128xf32> to vector<8x32xf32>
    %111 = vector.extract_strided_slice %106 {offsets = [0, 96], sizes = [8, 32], strides = [1, 1]} : vector<8x128xf32> to vector<8x32xf32>
    %112 = arith.mulf %109, %96 : vector<8x32xf32>
    %113 = arith.mulf %108, %110 : vector<8x32xf32>
    %114 = arith.addf %112, %113 : vector<8x32xf32>
    %115 = math.tanh %114 : vector<8x32xf32>
    %116 = arith.mulf %111, %115 : vector<8x32xf32>
    %117 = vector.extract_strided_slice %6 {offsets = [48, 0], sizes = [8, 128], strides = [1, 1]} : vector<64x128xf32> to vector<8x128xf32>
    %cst_21 = arith.constant dense<0.000000e+00> : vector<8x128xf32>
    %118 = tpu.matmul %116, %2, %cst_21 {dimension_numbers = #tpu.dot_dimension_numbers<[1], [0], [0], [1], [0, 0, 1, 1], [], []>} : vector<8x32xf32>, vector<32x128xf32>, vector<8x128xf32> -> vector<8x128xf32>
    %119 = arith.addf %117, %118 : vector<8x128xf32>
    %120 = arith.negf %119 : vector<8x128xf32>
    %121 = math.exp %120 : vector<8x128xf32>
    %cst_22 = arith.constant 1.000000e+00 : f32
    %122 = vector.broadcast %cst_22 : f32 to vector<8x128xf32>
    %123 = arith.addf %122, %121 : vector<8x128xf32>
    %124 = arith.divf %122, %123 : vector<8x128xf32>
    %125 = math.tanh %119 : vector<8x128xf32>
    %126 = vector.extract_strided_slice %124 {offsets = [0, 0], sizes = [8, 32], strides = [1, 1]} : vector<8x128xf32> to vector<8x32xf32>
    %127 = vector.extract_strided_slice %124 {offsets = [0, 32], sizes = [8, 32], strides = [1, 1]} : vector<8x128xf32> to vector<8x32xf32>
    %128 = vector.extract_strided_slice %125 {offsets = [0, 64], sizes = [8, 32], strides = [1, 1]} : vector<8x128xf32> to vector<8x32xf32>
    %129 = vector.extract_strided_slice %124 {offsets = [0, 96], sizes = [8, 32], strides = [1, 1]} : vector<8x128xf32> to vector<8x32xf32>
    %130 = arith.mulf %127, %114 : vector<8x32xf32>
    %131 = arith.mulf %126, %128 : vector<8x32xf32>
    %132 = arith.addf %130, %131 : vector<8x32xf32>
    %133 = math.tanh %132 : vector<8x32xf32>
    %134 = arith.mulf %129, %133 : vector<8x32xf32>
    %135 = vector.extract_strided_slice %6 {offsets = [56, 0], sizes = [8, 128], strides = [1, 1]} : vector<64x128xf32> to vector<8x128xf32>
    %cst_23 = arith.constant dense<0.000000e+00> : vector<8x128xf32>
    %136 = tpu.matmul %134, %2, %cst_23 {dimension_numbers = #tpu.dot_dimension_numbers<[1], [0], [0], [1], [0, 0, 1, 1], [], []>} : vector<8x32xf32>, vector<32x128xf32>, vector<8x128xf32> -> vector<8x128xf32>
    %137 = arith.addf %135, %136 : vector<8x128xf32>
    %138 = arith.negf %137 : vector<8x128xf32>
    %139 = math.exp %138 : vector<8x128xf32>
    %cst_24 = arith.constant 1.000000e+00 : f32
    %140 = vector.broadcast %cst_24 : f32 to vector<8x128xf32>
    %141 = arith.addf %140, %139 : vector<8x128xf32>
    %142 = arith.divf %140, %141 : vector<8x128xf32>
    %143 = math.tanh %137 : vector<8x128xf32>
    %144 = vector.extract_strided_slice %142 {offsets = [0, 0], sizes = [8, 32], strides = [1, 1]} : vector<8x128xf32> to vector<8x32xf32>
    %145 = vector.extract_strided_slice %142 {offsets = [0, 32], sizes = [8, 32], strides = [1, 1]} : vector<8x128xf32> to vector<8x32xf32>
    %146 = vector.extract_strided_slice %143 {offsets = [0, 64], sizes = [8, 32], strides = [1, 1]} : vector<8x128xf32> to vector<8x32xf32>
    %147 = vector.extract_strided_slice %142 {offsets = [0, 96], sizes = [8, 32], strides = [1, 1]} : vector<8x128xf32> to vector<8x32xf32>
    %148 = arith.mulf %145, %132 : vector<8x32xf32>
    %149 = arith.mulf %144, %146 : vector<8x32xf32>
    %150 = arith.addf %148, %149 : vector<8x32xf32>
    %151 = math.tanh %150 : vector<8x32xf32>
    %152 = arith.mulf %147, %151 : vector<8x32xf32>
    %153 = tpu.concatenate %26, %44, %62, %80, %98, %116, %134, %152 in 0 : vector<8x32xf32>, vector<8x32xf32>, vector<8x32xf32>, vector<8x32xf32>, vector<8x32xf32>, vector<8x32xf32>, vector<8x32xf32>, vector<8x32xf32> -> vector<64x32xf32>
    %c0_25 = arith.constant 0 : index
    %c0_26 = arith.constant 0 : index
    %154 = vector.load %arg4[%c0_25, %c0_26] : memref<32x128xf32, #tpu.memory_space<vmem>>, vector<32x128xf32>
    %c0_27 = arith.constant 0 : index
    %c0_28 = arith.constant 0 : index
    %155 = vector.load %arg5[%c0_27, %c0_28] : memref<32x128xf32, #tpu.memory_space<vmem>>, vector<32x128xf32>
    %c0_29 = arith.constant 0 : index
    %c0_30 = arith.constant 0 : index
    %156 = vector.load %arg6[%c0_29, %c0_30] : memref<1x128xf32, #tpu.memory_space<vmem>>, vector<1x128xf32>
    %cst_31 = arith.constant dense<0.000000e+00> : vector<64x128xf32>
    %157 = tpu.matmul %153, %154, %cst_31 {dimension_numbers = #tpu.dot_dimension_numbers<[1], [0], [0], [1], [0, 0, 1, 1], [], []>} : vector<64x32xf32>, vector<32x128xf32>, vector<64x128xf32> -> vector<64x128xf32>
    %158 = vector.broadcast %156 : vector<1x128xf32> to vector<64x128xf32>
    %159 = arith.addf %157, %158 : vector<64x128xf32>
    %cst_32 = arith.constant 0.000000e+00 : f32
    %160 = vector.broadcast %cst_32 : f32 to vector<8x32xf32>
    %cst_33 = arith.constant 0.000000e+00 : f32
    %161 = vector.broadcast %cst_33 : f32 to vector<8x32xf32>
    %162 = vector.extract_strided_slice %159 {offsets = [0, 0], sizes = [8, 128], strides = [1, 1]} : vector<64x128xf32> to vector<8x128xf32>
    %cst_34 = arith.constant dense<0.000000e+00> : vector<8x128xf32>
    %163 = tpu.matmul %160, %155, %cst_34 {dimension_numbers = #tpu.dot_dimension_numbers<[1], [0], [0], [1], [0, 0, 1, 1], [], []>} : vector<8x32xf32>, vector<32x128xf32>, vector<8x128xf32> -> vector<8x128xf32>
    %164 = arith.addf %162, %163 : vector<8x128xf32>
    %165 = arith.negf %164 : vector<8x128xf32>
    %166 = math.exp %165 : vector<8x128xf32>
    %cst_35 = arith.constant 1.000000e+00 : f32
    %167 = vector.broadcast %cst_35 : f32 to vector<8x128xf32>
    %168 = arith.addf %167, %166 : vector<8x128xf32>
    %169 = arith.divf %167, %168 : vector<8x128xf32>
    %170 = math.tanh %164 : vector<8x128xf32>
    %171 = vector.extract_strided_slice %169 {offsets = [0, 0], sizes = [8, 32], strides = [1, 1]} : vector<8x128xf32> to vector<8x32xf32>
    %172 = vector.extract_strided_slice %169 {offsets = [0, 32], sizes = [8, 32], strides = [1, 1]} : vector<8x128xf32> to vector<8x32xf32>
    %173 = vector.extract_strided_slice %170 {offsets = [0, 64], sizes = [8, 32], strides = [1, 1]} : vector<8x128xf32> to vector<8x32xf32>
    %174 = vector.extract_strided_slice %169 {offsets = [0, 96], sizes = [8, 32], strides = [1, 1]} : vector<8x128xf32> to vector<8x32xf32>
    %175 = arith.mulf %172, %161 : vector<8x32xf32>
    %176 = arith.mulf %171, %173 : vector<8x32xf32>
    %177 = arith.addf %175, %176 : vector<8x32xf32>
    %178 = math.tanh %177 : vector<8x32xf32>
    %179 = arith.mulf %174, %178 : vector<8x32xf32>
    %180 = vector.extract_strided_slice %159 {offsets = [8, 0], sizes = [8, 128], strides = [1, 1]} : vector<64x128xf32> to vector<8x128xf32>
    %cst_36 = arith.constant dense<0.000000e+00> : vector<8x128xf32>
    %181 = tpu.matmul %179, %155, %cst_36 {dimension_numbers = #tpu.dot_dimension_numbers<[1], [0], [0], [1], [0, 0, 1, 1], [], []>} : vector<8x32xf32>, vector<32x128xf32>, vector<8x128xf32> -> vector<8x128xf32>
    %182 = arith.addf %180, %181 : vector<8x128xf32>
    %183 = arith.negf %182 : vector<8x128xf32>
    %184 = math.exp %183 : vector<8x128xf32>
    %cst_37 = arith.constant 1.000000e+00 : f32
    %185 = vector.broadcast %cst_37 : f32 to vector<8x128xf32>
    %186 = arith.addf %185, %184 : vector<8x128xf32>
    %187 = arith.divf %185, %186 : vector<8x128xf32>
    %188 = math.tanh %182 : vector<8x128xf32>
    %189 = vector.extract_strided_slice %187 {offsets = [0, 0], sizes = [8, 32], strides = [1, 1]} : vector<8x128xf32> to vector<8x32xf32>
    %190 = vector.extract_strided_slice %187 {offsets = [0, 32], sizes = [8, 32], strides = [1, 1]} : vector<8x128xf32> to vector<8x32xf32>
    %191 = vector.extract_strided_slice %188 {offsets = [0, 64], sizes = [8, 32], strides = [1, 1]} : vector<8x128xf32> to vector<8x32xf32>
    %192 = vector.extract_strided_slice %187 {offsets = [0, 96], sizes = [8, 32], strides = [1, 1]} : vector<8x128xf32> to vector<8x32xf32>
    %193 = arith.mulf %190, %177 : vector<8x32xf32>
    %194 = arith.mulf %189, %191 : vector<8x32xf32>
    %195 = arith.addf %193, %194 : vector<8x32xf32>
    %196 = math.tanh %195 : vector<8x32xf32>
    %197 = arith.mulf %192, %196 : vector<8x32xf32>
    %198 = vector.extract_strided_slice %159 {offsets = [16, 0], sizes = [8, 128], strides = [1, 1]} : vector<64x128xf32> to vector<8x128xf32>
    %cst_38 = arith.constant dense<0.000000e+00> : vector<8x128xf32>
    %199 = tpu.matmul %197, %155, %cst_38 {dimension_numbers = #tpu.dot_dimension_numbers<[1], [0], [0], [1], [0, 0, 1, 1], [], []>} : vector<8x32xf32>, vector<32x128xf32>, vector<8x128xf32> -> vector<8x128xf32>
    %200 = arith.addf %198, %199 : vector<8x128xf32>
    %201 = arith.negf %200 : vector<8x128xf32>
    %202 = math.exp %201 : vector<8x128xf32>
    %cst_39 = arith.constant 1.000000e+00 : f32
    %203 = vector.broadcast %cst_39 : f32 to vector<8x128xf32>
    %204 = arith.addf %203, %202 : vector<8x128xf32>
    %205 = arith.divf %203, %204 : vector<8x128xf32>
    %206 = math.tanh %200 : vector<8x128xf32>
    %207 = vector.extract_strided_slice %205 {offsets = [0, 0], sizes = [8, 32], strides = [1, 1]} : vector<8x128xf32> to vector<8x32xf32>
    %208 = vector.extract_strided_slice %205 {offsets = [0, 32], sizes = [8, 32], strides = [1, 1]} : vector<8x128xf32> to vector<8x32xf32>
    %209 = vector.extract_strided_slice %206 {offsets = [0, 64], sizes = [8, 32], strides = [1, 1]} : vector<8x128xf32> to vector<8x32xf32>
    %210 = vector.extract_strided_slice %205 {offsets = [0, 96], sizes = [8, 32], strides = [1, 1]} : vector<8x128xf32> to vector<8x32xf32>
    %211 = arith.mulf %208, %195 : vector<8x32xf32>
    %212 = arith.mulf %207, %209 : vector<8x32xf32>
    %213 = arith.addf %211, %212 : vector<8x32xf32>
    %214 = math.tanh %213 : vector<8x32xf32>
    %215 = arith.mulf %210, %214 : vector<8x32xf32>
    %216 = vector.extract_strided_slice %159 {offsets = [24, 0], sizes = [8, 128], strides = [1, 1]} : vector<64x128xf32> to vector<8x128xf32>
    %cst_40 = arith.constant dense<0.000000e+00> : vector<8x128xf32>
    %217 = tpu.matmul %215, %155, %cst_40 {dimension_numbers = #tpu.dot_dimension_numbers<[1], [0], [0], [1], [0, 0, 1, 1], [], []>} : vector<8x32xf32>, vector<32x128xf32>, vector<8x128xf32> -> vector<8x128xf32>
    %218 = arith.addf %216, %217 : vector<8x128xf32>
    %219 = arith.negf %218 : vector<8x128xf32>
    %220 = math.exp %219 : vector<8x128xf32>
    %cst_41 = arith.constant 1.000000e+00 : f32
    %221 = vector.broadcast %cst_41 : f32 to vector<8x128xf32>
    %222 = arith.addf %221, %220 : vector<8x128xf32>
    %223 = arith.divf %221, %222 : vector<8x128xf32>
    %224 = math.tanh %218 : vector<8x128xf32>
    %225 = vector.extract_strided_slice %223 {offsets = [0, 0], sizes = [8, 32], strides = [1, 1]} : vector<8x128xf32> to vector<8x32xf32>
    %226 = vector.extract_strided_slice %223 {offsets = [0, 32], sizes = [8, 32], strides = [1, 1]} : vector<8x128xf32> to vector<8x32xf32>
    %227 = vector.extract_strided_slice %224 {offsets = [0, 64], sizes = [8, 32], strides = [1, 1]} : vector<8x128xf32> to vector<8x32xf32>
    %228 = vector.extract_strided_slice %223 {offsets = [0, 96], sizes = [8, 32], strides = [1, 1]} : vector<8x128xf32> to vector<8x32xf32>
    %229 = arith.mulf %226, %213 : vector<8x32xf32>
    %230 = arith.mulf %225, %227 : vector<8x32xf32>
    %231 = arith.addf %229, %230 : vector<8x32xf32>
    %232 = math.tanh %231 : vector<8x32xf32>
    %233 = arith.mulf %228, %232 : vector<8x32xf32>
    %234 = vector.extract_strided_slice %159 {offsets = [32, 0], sizes = [8, 128], strides = [1, 1]} : vector<64x128xf32> to vector<8x128xf32>
    %cst_42 = arith.constant dense<0.000000e+00> : vector<8x128xf32>
    %235 = tpu.matmul %233, %155, %cst_42 {dimension_numbers = #tpu.dot_dimension_numbers<[1], [0], [0], [1], [0, 0, 1, 1], [], []>} : vector<8x32xf32>, vector<32x128xf32>, vector<8x128xf32> -> vector<8x128xf32>
    %236 = arith.addf %234, %235 : vector<8x128xf32>
    %237 = arith.negf %236 : vector<8x128xf32>
    %238 = math.exp %237 : vector<8x128xf32>
    %cst_43 = arith.constant 1.000000e+00 : f32
    %239 = vector.broadcast %cst_43 : f32 to vector<8x128xf32>
    %240 = arith.addf %239, %238 : vector<8x128xf32>
    %241 = arith.divf %239, %240 : vector<8x128xf32>
    %242 = math.tanh %236 : vector<8x128xf32>
    %243 = vector.extract_strided_slice %241 {offsets = [0, 0], sizes = [8, 32], strides = [1, 1]} : vector<8x128xf32> to vector<8x32xf32>
    %244 = vector.extract_strided_slice %241 {offsets = [0, 32], sizes = [8, 32], strides = [1, 1]} : vector<8x128xf32> to vector<8x32xf32>
    %245 = vector.extract_strided_slice %242 {offsets = [0, 64], sizes = [8, 32], strides = [1, 1]} : vector<8x128xf32> to vector<8x32xf32>
    %246 = vector.extract_strided_slice %241 {offsets = [0, 96], sizes = [8, 32], strides = [1, 1]} : vector<8x128xf32> to vector<8x32xf32>
    %247 = arith.mulf %244, %231 : vector<8x32xf32>
    %248 = arith.mulf %243, %245 : vector<8x32xf32>
    %249 = arith.addf %247, %248 : vector<8x32xf32>
    %250 = math.tanh %249 : vector<8x32xf32>
    %251 = arith.mulf %246, %250 : vector<8x32xf32>
    %252 = vector.extract_strided_slice %159 {offsets = [40, 0], sizes = [8, 128], strides = [1, 1]} : vector<64x128xf32> to vector<8x128xf32>
    %cst_44 = arith.constant dense<0.000000e+00> : vector<8x128xf32>
    %253 = tpu.matmul %251, %155, %cst_44 {dimension_numbers = #tpu.dot_dimension_numbers<[1], [0], [0], [1], [0, 0, 1, 1], [], []>} : vector<8x32xf32>, vector<32x128xf32>, vector<8x128xf32> -> vector<8x128xf32>
    %254 = arith.addf %252, %253 : vector<8x128xf32>
    %255 = arith.negf %254 : vector<8x128xf32>
    %256 = math.exp %255 : vector<8x128xf32>
    %cst_45 = arith.constant 1.000000e+00 : f32
    %257 = vector.broadcast %cst_45 : f32 to vector<8x128xf32>
    %258 = arith.addf %257, %256 : vector<8x128xf32>
    %259 = arith.divf %257, %258 : vector<8x128xf32>
    %260 = math.tanh %254 : vector<8x128xf32>
    %261 = vector.extract_strided_slice %259 {offsets = [0, 0], sizes = [8, 32], strides = [1, 1]} : vector<8x128xf32> to vector<8x32xf32>
    %262 = vector.extract_strided_slice %259 {offsets = [0, 32], sizes = [8, 32], strides = [1, 1]} : vector<8x128xf32> to vector<8x32xf32>
    %263 = vector.extract_strided_slice %260 {offsets = [0, 64], sizes = [8, 32], strides = [1, 1]} : vector<8x128xf32> to vector<8x32xf32>
    %264 = vector.extract_strided_slice %259 {offsets = [0, 96], sizes = [8, 32], strides = [1, 1]} : vector<8x128xf32> to vector<8x32xf32>
    %265 = arith.mulf %262, %249 : vector<8x32xf32>
    %266 = arith.mulf %261, %263 : vector<8x32xf32>
    %267 = arith.addf %265, %266 : vector<8x32xf32>
    %268 = math.tanh %267 : vector<8x32xf32>
    %269 = arith.mulf %264, %268 : vector<8x32xf32>
    %270 = vector.extract_strided_slice %159 {offsets = [48, 0], sizes = [8, 128], strides = [1, 1]} : vector<64x128xf32> to vector<8x128xf32>
    %cst_46 = arith.constant dense<0.000000e+00> : vector<8x128xf32>
    %271 = tpu.matmul %269, %155, %cst_46 {dimension_numbers = #tpu.dot_dimension_numbers<[1], [0], [0], [1], [0, 0, 1, 1], [], []>} : vector<8x32xf32>, vector<32x128xf32>, vector<8x128xf32> -> vector<8x128xf32>
    %272 = arith.addf %270, %271 : vector<8x128xf32>
    %273 = arith.negf %272 : vector<8x128xf32>
    %274 = math.exp %273 : vector<8x128xf32>
    %cst_47 = arith.constant 1.000000e+00 : f32
    %275 = vector.broadcast %cst_47 : f32 to vector<8x128xf32>
    %276 = arith.addf %275, %274 : vector<8x128xf32>
    %277 = arith.divf %275, %276 : vector<8x128xf32>
    %278 = math.tanh %272 : vector<8x128xf32>
    %279 = vector.extract_strided_slice %277 {offsets = [0, 0], sizes = [8, 32], strides = [1, 1]} : vector<8x128xf32> to vector<8x32xf32>
    %280 = vector.extract_strided_slice %277 {offsets = [0, 32], sizes = [8, 32], strides = [1, 1]} : vector<8x128xf32> to vector<8x32xf32>
    %281 = vector.extract_strided_slice %278 {offsets = [0, 64], sizes = [8, 32], strides = [1, 1]} : vector<8x128xf32> to vector<8x32xf32>
    %282 = vector.extract_strided_slice %277 {offsets = [0, 96], sizes = [8, 32], strides = [1, 1]} : vector<8x128xf32> to vector<8x32xf32>
    %283 = arith.mulf %280, %267 : vector<8x32xf32>
    %284 = arith.mulf %279, %281 : vector<8x32xf32>
    %285 = arith.addf %283, %284 : vector<8x32xf32>
    %286 = math.tanh %285 : vector<8x32xf32>
    %287 = arith.mulf %282, %286 : vector<8x32xf32>
    %288 = vector.extract_strided_slice %159 {offsets = [56, 0], sizes = [8, 128], strides = [1, 1]} : vector<64x128xf32> to vector<8x128xf32>
    %cst_48 = arith.constant dense<0.000000e+00> : vector<8x128xf32>
    %289 = tpu.matmul %287, %155, %cst_48 {dimension_numbers = #tpu.dot_dimension_numbers<[1], [0], [0], [1], [0, 0, 1, 1], [], []>} : vector<8x32xf32>, vector<32x128xf32>, vector<8x128xf32> -> vector<8x128xf32>
    %290 = arith.addf %288, %289 : vector<8x128xf32>
    %291 = arith.negf %290 : vector<8x128xf32>
    %292 = math.exp %291 : vector<8x128xf32>
    %cst_49 = arith.constant 1.000000e+00 : f32
    %293 = vector.broadcast %cst_49 : f32 to vector<8x128xf32>
    %294 = arith.addf %293, %292 : vector<8x128xf32>
    %295 = arith.divf %293, %294 : vector<8x128xf32>
    %296 = math.tanh %290 : vector<8x128xf32>
    %297 = vector.extract_strided_slice %295 {offsets = [0, 0], sizes = [8, 32], strides = [1, 1]} : vector<8x128xf32> to vector<8x32xf32>
    %298 = vector.extract_strided_slice %295 {offsets = [0, 32], sizes = [8, 32], strides = [1, 1]} : vector<8x128xf32> to vector<8x32xf32>
    %299 = vector.extract_strided_slice %296 {offsets = [0, 64], sizes = [8, 32], strides = [1, 1]} : vector<8x128xf32> to vector<8x32xf32>
    %300 = vector.extract_strided_slice %295 {offsets = [0, 96], sizes = [8, 32], strides = [1, 1]} : vector<8x128xf32> to vector<8x32xf32>
    %301 = arith.mulf %298, %285 : vector<8x32xf32>
    %302 = arith.mulf %297, %299 : vector<8x32xf32>
    %303 = arith.addf %301, %302 : vector<8x32xf32>
    %304 = math.tanh %303 : vector<8x32xf32>
    %305 = arith.mulf %300, %304 : vector<8x32xf32>
    %c0_50 = arith.constant 0 : index
    %c0_51 = arith.constant 0 : index
    %306 = vector.load %arg7[%c0_50, %c0_51] : memref<32x128xf32, #tpu.memory_space<vmem>>, vector<32x128xf32>
    %cst_52 = arith.constant dense<0.000000e+00> : vector<8x128xf32>
    %307 = tpu.matmul %305, %306, %cst_52 {dimension_numbers = #tpu.dot_dimension_numbers<[1], [0], [0], [1], [0, 0, 1, 1], [], []>} : vector<8x32xf32>, vector<32x128xf32>, vector<8x128xf32> -> vector<8x128xf32>
    %c0_53 = arith.constant 0 : index
    %c0_54 = arith.constant 0 : index
    %308 = vector.load %arg8[%c0_53, %c0_54] : memref<1x128xf32, #tpu.memory_space<vmem>>, vector<1x128xf32>
    %309 = vector.broadcast %308 : vector<1x128xf32> to vector<8x128xf32>
    %310 = arith.addf %307, %309 : vector<8x128xf32>
    %311 = tpu.iota {dimensions = array<i32: 1>} : vector<8x128xi32>
    %c8_i32 = arith.constant 8 : i32
    %312 = vector.broadcast %c8_i32 : i32 to vector<8x128xi32>
    %313 = arith.cmpi slt, %311, %312 : vector<8x128xi32>
    %cst_55 = arith.constant -1.000000e+30 : f32
    %314 = vector.broadcast %cst_55 : f32 to vector<8x128xf32>
    %315 = arith.select %313, %310, %314 : vector<8x128xi1>, vector<8x128xf32>
    %cst_56 = arith.constant dense<0xFF800000> : vector<8xf32>
    %316 = vector.multi_reduction <maximumf>, %315, %cst_56 [1] : vector<8x128xf32> to vector<8xf32>
    %317 = vector.shape_cast %316 : vector<8xf32> to vector<8x1xf32>
    %318 = vector.broadcast %317 : vector<8x1xf32> to vector<8x128xf32>
    %319 = arith.subf %315, %318 : vector<8x128xf32>
    %320 = math.exp %319 : vector<8x128xf32>
    %cst_57 = arith.constant dense<0.000000e+00> : vector<8xf32>
    %321 = vector.multi_reduction <add>, %320, %cst_57 [1] : vector<8x128xf32> to vector<8xf32>
    %322 = vector.shape_cast %321 : vector<8xf32> to vector<8x1xf32>
    %323 = math.log %322 : vector<8x1xf32>
    %324 = vector.broadcast %323 : vector<8x1xf32> to vector<8x128xf32>
    %325 = arith.subf %319, %324 : vector<8x128xf32>
    %c0_58 = arith.constant 0 : index
    %c0_59 = arith.constant 0 : index
    %326 = vector.load %arg9[%c0_58, %c0_59] : memref<8x128xf32, #tpu.memory_space<vmem>>, vector<8x128xf32>
    tpu.vector_store %arg9[%c0_58, %c0_59], %325 {strides = array<i32>} : memref<8x128xf32, #tpu.memory_space<vmem>>, vector<8x128xf32>,
    return
  }
}

</mosaic_0001>

<bundles_post_ra>
// kernel: tpu_custom_call.1
= control target key start
LH: loop header
LB: loop body
LE: loop exit
PB: predicated region body
PF: predicated region fallthrough
CT: control target
= control target key end

     0   :  { %14 = vsyncpa [#allocation3], 0  ;;  %s1894_s0 = inlined_call_operand.vmem [shape: f32[64,16], index: 0, kind: input, shape index: {}]   ;;  %s1895_s1 = inlined_call_operand.vmem [shape: f32[16,128], index: 1, kind: input, shape index: {}]   ;;  %s1896_s2 = inlined_call_operand.vmem [shape: f32[32,128], index: 2, kind: input, shape index: {}]   ;;  %s1897_s3 = inlined_call_operand.vmem [shape: f32[1,128], index: 3, kind: input, shape index: {}]   ;;  %s1898_s4 = inlined_call_operand.vmem [shape: f32[32,128], index: 4, kind: input, shape index: {}]   ;;  %s1899_s5 = inlined_call_operand.hbm [shape: f32[32,128], index: 5, kind: input, shape index: {}]   ;;  %s1900_s6 = inlined_call_operand.vmem [shape: f32[1,128], index: 6, kind: input, shape index: {}]   ;;  %s1901_s7 = inlined_call_operand.hbm [shape: f32[32,128], index: 7, kind: input, shape index: {}]   ;;  %s1902_s8 = inlined_call_operand.vmem [shape: f32[1,128], index: 8, kind: input, shape index: {}]   ;;  %s1903_s9 = inlined_call_operand.hbm [shape: f32[8,128], index: 9, kind: output, shape index: {}]  }
   0x1   :  { %15 = vsyncpa [#allocation6], 0 }
   0x2   :  { %16 = vsyncpa [#allocation4], 0  ;;  %s31_s11 = sshll.u32 %s1899_s5, 4  ;;  %s1544_s12 = smov [#allocation2]   ;;  %s32_s11 = int_to_ptr.hbm [resolvable:$true] %s31_s11 }
   0x3   :  { %s33_s13 = sshll.u32 %s1544_s12, 4  ;;  %s46_s16 = sshll.u32 %s1901_s7, 4  ;;  %s34_s13 = int_to_ptr.vmem [resolvable:$true] %s33_s13  ;;  %s47_s16 = int_to_ptr.hbm [resolvable:$true] %s46_s16 }
   0x4   :  { %s1545_s17 = smov 128   ;;  %s1546_s18 = smov 8  }
   0x5   :  { %39 = dma.hbm_to_vmem [thread:$0]  %s32_s11, 512, %s34_s13, [#allocation3], %s1545_s17, %s1545_s17, %s1546_s18  }
   0x6   :  { %s1547_s19 = smov [#allocation5]  }
   0x7   :  { %s48_s20 = sshll.u32 %s1547_s19, 4  ;;  %s49_s20 = int_to_ptr.vmem [resolvable:$true] %s48_s20 }
   0x8   :  { %54 = dma.hbm_to_vmem [thread:$0]  %s47_s16, 512, %s49_s20, [#allocation6], %s1545_s17, %s1545_s17, %s1546_s18  }
   0x9   :  { %1538 = dma.done.wait [#allocation3], 512  }
   0xa   :  { %1539 = vsyncadd [#allocation3], 4294966784 }
   0xb   :  { %1540 = dma.done.wait [#allocation6], 512  }
   0xc   :  { %1541 = vsyncadd [#allocation6], 4294966784  ;;  %v1611_v0 = vld [vmem:[%s1896_s2 + $0x18] sm:$0xff]  ;;  %v74_v1 = vld [vmem:[%s1895_s1 + $0x8] sm:$0xff]  ;;  %vm83_vm0 = vcmask 130048   ;;  %v1548_v7 = vmov 0.0  }
   0xd   :  { %v1619_v2 = vld [vmem:[%s1896_s2 + $0x10] sm:$0xff]  ;;  %165 = vmatpush.msra.mxu1 %v1611_v0  ;;  %122 = vmatpush.msra.mxu0 %v74_v1  ;;  %v73_v3 = vld [vmem:[%s1895_s1] sm:$0xff]  ;;  %v1631_v5 = vld [vmem:[%s1896_s2 + $0x8] sm:$0xff]  ;;  %s1549_s12 = smov 64   ;;  %s1550_s13 = smov 32   ;;  %vm149_vm5 = vcmask 261120  }
   0xe   :  { %v65_v4 = vld [vmem:[%s1894_s0] sm:$0xff]  ;;  %228 = vmatpush.msra.mxu2 %v1611_v0  ;;  %v655_v33 = vld [vmem:[%s1898_s4 + $0x18] sm:$0xff]  ;;  %v654_v34 = vld [vmem:[%s1898_s4 + $0x10] sm:$0xff] }
   0xf   :  { %166 = vmatpush.msra.mxu1 %v1619_v2  ;;  %123 = vmatpush.msra.mxu0 %v73_v3  ;;  %v1639_v6 = vld [vmem:[%s1896_s2] sm:$0xff]  ;;  %v653_v35 = vld [vmem:[%s1898_s4 + $0x8] sm:$0xff] }
  0x10   :  { %1275 = vmatmul.msk.f32.vlgmr.msra.gmra.mxu0 %vm83_vm0, %v65_v4  ;;  %229 = vmatpush.msra.mxu2 %v1619_v2  ;;  %v1666_v8 = vld [vmem:[%s1897_s3] ss:$0 sm:$0xff]  ;;  %v66_v39 = vld [vmem:[%s1894_s0 + $0x8] sm:$0xff] }
  0x11   :  { %167 = vmatpush.msra.mxu1 %v1631_v5  ;;  %480 = vmatpush.msrb.mxu0 %v1611_v0  ;;  %v652_v36 = vld [vmem:[%s1898_s4] sm:$0xff] }
  0x12   :  { %230 = vmatpush.msra.mxu2 %v1631_v5  ;;  %681 = vmatpush.msra.mxu3 %v655_v33 }
  0x13   :  { %168 = vmatpush.msra.mxu1 %v1639_v6  ;;  %481 = vmatpush.msrb.mxu0 %v1619_v2 }
  0x14   :  { %169 = vmatmul.f32.vlgmr.msra.gmra.mxu1 %v1548_v7  ;;  %231 = vmatpush.msra.mxu2 %v1639_v6 }
  0x15   :  { %354 = vmatpush.msrb.mxu1 %v1611_v0  ;;  %482 = vmatpush.msrb.mxu0 %v1631_v5 }
  0x16   :  { %291 = vmatpush.msrb.mxu2 %v1611_v0  ;;  %682 = vmatpush.msra.mxu3 %v654_v34 }
  0x17   :  { %355 = vmatpush.msrb.mxu1 %v1619_v2  ;;  %483 = vmatpush.msrb.mxu0 %v1639_v6 }
  0x18   :  { %292 = vmatpush.msrb.mxu2 %v1619_v2  ;;  %683 = vmatpush.msra.mxu3 %v653_v35 }
  0x19   :  { %356 = vmatpush.msrb.mxu1 %v1631_v5  ;;  %1276 = vmatmul.msk.f32.gmra.mxu0 %vm83_vm0, %v66_v39 }
  0x1a   :  { %293 = vmatpush.msrb.mxu2 %v1631_v5  ;;  %684 = vmatpush.msra.mxu3 %v652_v36 }
  0x1b   :  { %357 = vmatpush.msrb.mxu1 %v1639_v6 }
  0x1c   :  { %294 = vmatpush.msrb.mxu2 %v1639_v6 }
  0x1d   :  { %543 = vmatpush.msra.mxu1 %v1611_v0 }
  0x1f   :  { %544 = vmatpush.msra.mxu1 %v1619_v2 }
  0x21   :  { %545 = vmatpush.msra.mxu1 %v1631_v5 }
  0x23   :  { %546 = vmatpush.msra.mxu1 %v1639_v6 }
  0x8d   :  { %v125_v9 = vpop.f32.mrf.mxu0 }
  0x8e   :  { %v126_v10 = vadd.f32 %v1666_v8, %v125_v9  ;;  %v67_v9 = vld [vmem:[%s1894_s0 + $0x10] sm:$0xff] }
  0x8f   :  { %1277 = vmatmul.msk.f32.gmra.mxu0 %vm83_vm0, %v67_v9 }
  0x91   :  { %v170_v11 = vpop.f32.mrf.mxu1 }
  0x92   :  { %v173_v12 = vadd.f32 %v170_v11, %v126_v10 }
  0x94   :  { %1333 = vtanh.f32 %v173_v12  ;;  %v1283_v14 = vmul.f32 -1.442695, %v173_v12 }
  0x96   :  { %1335 = vpow2.f32 %v1283_v14  ;;  %v128_v41 = vpop.f32.mrf.mxu0 }
  0x97   :  { %v129_v42 = vadd.f32 %v1666_v8, %v128_v41 }
  0x9a   :  { %v1334_v13 = vpop.eup %1333 }
  0x9b   :  { %196 = vrot.lane.b32.xlu0 %v1334_v13, %s1549_s12 }
  0x9c   :  { %v1336_v15 = vpop.eup %1335 }
  0x9d   :  { %v177_v16 = vadd.f32 1.0, %v1336_v15 }
  0x9f   :  { %1337 = vrcp.f32 %v177_v16  ;;  %v189_v22 = vand.u32 2147483648, %v177_v16  ;;  %vm183_vm2 = vweird.f32 %v177_v16  ;;  %v187_v23 = vand.u32 2147483647, %v177_v16 }
  0xa1   :  { %v190_v25 = vor.u32 1.1754944e-38, %v189_v22  ;;  %vm188_vm4 = vcmp.eq.f32.partialorder %v187_v23, 8.507059e+37 }
  0xa5   :  { %v1338_v17 = vpop.eup %1337 }
  0xa6   :  { %v179_v18 = vmul.f32 %v1338_v17, %v177_v16  ;;  %vm184_vm1 = vweird.f32 %v1338_v17 }
  0xa7   :  { %vm185_vm3 = vmor %vm183_vm2, %vm184_vm1 }
  0xa8   :  { %v180_v19 = vsub.f32 1.0, %v179_v18 }
  0xaa   :  { %v181_v20 = vmul.f32 %v1338_v17, %v180_v19 }
  0xac   :  { %v182_v21 = vadd.f32 %v1338_v17, %v181_v20 }
  0xae   :  { %v186_v24 = vsel %vm185_vm3, %v1338_v17, %v182_v21 }
  0xaf   :  { %v191_v27 = vsel %vm188_vm4, %v190_v25, %v186_v24 }
  0xb0   :  { %v194_v29 = vmul.f32 0.0, %v191_v27 }
 0x10c   :  { %v131_v11 = vpop.f32.mrf.mxu0 }
 0x10d   :  { %v197_v26 = vpop.permute.xlu0 %196  ;;  %v132_v12 = vadd.f32 %v1666_v8, %v131_v11 }
 0x10e   :  { %v199_v28 = vmul.f32 %v197_v26, %v191_v27 }
 0x110   :  { %201 = vrot.lane.b32.xlu0 %v199_v28, %s1550_s13 }
 0x182   :  { %v202_v30 = vpop.permute.xlu0 %201 }
 0x183   :  { %v204_v31 = vadd.f32 %v202_v30, %v194_v29 }
 0x185   :  { %1339 = vtanh.f32 %v204_v31 }
 0x18b   :  { %v1340_v32 = vpop.eup %1339 }
 0x18c   :  { %207 = vrot.lane.b32.xlu1 %v1340_v32, %s1549_s12 }
 0x1fe   :  { %v208_v37 = vpop.permute.xlu1 %207 }
 0x1ff   :  { %v210_v38 = vmul.f32 %v208_v37, %v191_v27 }
 0x201   :  { %212 = vrot.lane.b32.xlu1 %v210_v38, %s1550_s13 }
 0x273   :  { %v213_v40 = vpop.permute.xlu1 %212 }
 0x274   :  { %1284 = vmatmul.msk.f32.vlgmr.msra.gmra.mxu2 %vm149_vm5, %v213_v40  ;;  %1298 = vmatmul.msk.f32.vlgmr.msra.gmra.mxu3 %vm149_vm5, %v213_v40 }
 0x275   :  { %417 = vmatpush.msra.mxu2 %v1611_v0 }
 0x277   :  { %418 = vmatpush.msra.mxu2 %v1619_v2 }
 0x279   :  { %419 = vmatpush.msra.mxu2 %v1631_v5 }
 0x27b   :  { %420 = vmatpush.msra.mxu2 %v1639_v6 }
 0x2f7   :  { %v233_v43 = vpop.f32.mrf.mxu2 }
 0x2f8   :  { %v236_v44 = vadd.f32 %v233_v43, %v129_v42 }
 0x2fa   :  { %1341 = vtanh.f32 %v236_v44  ;;  %v1285_v46 = vmul.f32 -1.442695, %v236_v44 }
 0x2fc   :  { %1343 = vpow2.f32 %v1285_v46 }
 0x300   :  { %v1342_v45 = vpop.eup %1341 }
 0x301   :  { %259 = vrot.lane.b32.xlu2 %v1342_v45, %s1549_s12 }
 0x302   :  { %v1344_v47 = vpop.eup %1343 }
 0x303   :  { %v240_v48 = vadd.f32 1.0, %v1344_v47 }
 0x305   :  { %1345 = vrcp.f32 %v240_v48  ;;  %v252_v54 = vand.u32 2147483648, %v240_v48  ;;  %vm246_vm7 = vweird.f32 %v240_v48  ;;  %v250_v55 = vand.u32 2147483647, %v240_v48 }
 0x307   :  { %v253_v57 = vor.u32 1.1754944e-38, %v252_v54  ;;  %vm251_vm9 = vcmp.eq.f32.partialorder %v250_v55, 8.507059e+37 }
 0x30b   :  { %v1346_v49 = vpop.eup %1345 }
 0x30c   :  { %v242_v50 = vmul.f32 %v1346_v49, %v240_v48  ;;  %vm247_vm6 = vweird.f32 %v1346_v49 }
 0x30d   :  { %vm248_vm8 = vmor %vm246_vm7, %vm247_vm6 }
 0x30e   :  { %v243_v51 = vsub.f32 1.0, %v242_v50 }
 0x310   :  { %v244_v52 = vmul.f32 %v1346_v49, %v243_v51 }
 0x312   :  { %v245_v53 = vadd.f32 %v1346_v49, %v244_v52 }
 0x314   :  { %v249_v56 = vsel %vm248_vm8, %v1346_v49, %v245_v53 }
 0x315   :  { %v254_v59 = vsel %vm251_vm9, %v253_v57, %v249_v56 }
 0x316   :  { %v257_v61 = vmul.f32 %v254_v59, %v204_v31  ;;  %v68_v31 = vld [vmem:[%s1894_s0 + $0x18] sm:$0xff] }
 0x317   :  { %1278 = vmatmul.msk.f32.gmra.mxu0 %vm83_vm0, %v68_v31 }
 0x35b   :  { %v260_v58 = vpop.permute.xlu2 %259 }
 0x35c   :  { %v262_v60 = vmul.f32 %v260_v58, %v254_v59 }
 0x35e   :  { %264 = vrot.lane.b32.xlu2 %v262_v60, %s1550_s13 }
 0x394   :  { %v134_v35 = vpop.f32.mrf.mxu0 }
 0x395   :  { %v135_v36 = vadd.f32 %v1666_v8, %v134_v35 }
 0x3b8   :  { %v265_v62 = vpop.permute.xlu2 %264 }
 0x3b9   :  { %v267_v63 = vadd.f32 %v265_v62, %v257_v61  ;;  %v69_v61 = vld [vmem:[%s1894_s0 + $0x20] sm:$0xff] }
 0x3ba   :  { %1279 = vmatmul.msk.f32.gmra.mxu0 %vm83_vm0, %v69_v61  ;;  %v1769_v61 = vld [vmem:[#allocation2 + $0x8] sm:$0xff] }
 0x3bb   :  { %1347 = vtanh.f32 %v267_v63 }
 0x3c1   :  { %v1348_v1 = vpop.eup %1347 }
 0x3c2   :  { %270 = vrot.lane.b32.xlu0 %v1348_v1, %s1549_s12 }
 0x434   :  { %v271_v3 = vpop.permute.xlu0 %270 }
 0x435   :  { %v273_v4 = vmul.f32 %v271_v3, %v254_v59 }
 0x437   :  { %275 = vrot.lane.b32.xlu1 %v273_v4, %s1550_s13 }
 0x4a9   :  { %v276_v10 = vpop.permute.xlu1 %275 }
 0x4aa   :  { %1286 = vmatmul.msk.f32.vlgmr.msrb.gmra.mxu2 %vm149_vm5, %v276_v10  ;;  %1299 = vmatmul.msk.f32.gmra.mxu3 %vm149_vm5, %v276_v10 }
 0x4ab   :  { %606 = vmatpush.msrb.mxu2 %v1611_v0 }
 0x4ad   :  { %607 = vmatpush.msrb.mxu2 %v1619_v2 }
 0x4af   :  { %608 = vmatpush.msrb.mxu2 %v1631_v5 }
 0x4b1   :  { %609 = vmatpush.msrb.mxu2 %v1639_v6 }
 0x52d   :  { %v296_v13 = vpop.f32.mrf.mxu2 }
 0x52e   :  { %v299_v14 = vadd.f32 %v296_v13, %v132_v12 }
 0x530   :  { %1349 = vtanh.f32 %v299_v14  ;;  %v1287_v16 = vmul.f32 -1.442695, %v299_v14 }
 0x532   :  { %1351 = vpow2.f32 %v1287_v16 }
 0x536   :  { %v1350_v15 = vpop.eup %1349 }
 0x537   :  { %322 = vrot.lane.b32.xlu2 %v1350_v15, %s1549_s12 }
 0x538   :  { %v1352_v17 = vpop.eup %1351 }
 0x539   :  { %v303_v18 = vadd.f32 1.0, %v1352_v17 }
 0x53b   :  { %1353 = vrcp.f32 %v303_v18  ;;  %v315_v6 = vand.u32 2147483648, %v303_v18  ;;  %vm309_vm11 = vweird.f32 %v303_v18  ;;  %v313_v21 = vand.u32 2147483647, %v303_v18 }
 0x53d   :  { %v316_v23 = vor.u32 1.1754944e-38, %v315_v6  ;;  %vm314_vm13 = vcmp.eq.f32.partialorder %v313_v21, 8.507059e+37 }
 0x541   :  { %v1354_v0 = vpop.eup %1353 }
 0x542   :  { %v305_v2 = vmul.f32 %v1354_v0, %v303_v18  ;;  %vm310_vm10 = vweird.f32 %v1354_v0 }
 0x543   :  { %vm311_vm12 = vmor %vm309_vm11, %vm310_vm10 }
 0x544   :  { %v306_v19 = vsub.f32 1.0, %v305_v2 }
 0x546   :  { %v307_v5 = vmul.f32 %v1354_v0, %v306_v19 }
 0x548   :  { %v308_v20 = vadd.f32 %v1354_v0, %v307_v5 }
 0x54a   :  { %v312_v22 = vsel %vm311_vm12, %v1354_v0, %v308_v20 }
 0x54b   :  { %v317_v25 = vsel %vm314_vm13, %v316_v23, %v312_v22 }
 0x54c   :  { %v320_v27 = vmul.f32 %v317_v25, %v267_v63  ;;  %v137_v63 = vpop.f32.mrf.mxu0 }
 0x54d   :  { %v138_v1 = vadd.f32 %v1666_v8, %v137_v63 }
 0x591   :  { %v323_v24 = vpop.permute.xlu2 %322 }
 0x592   :  { %v325_v26 = vmul.f32 %v323_v24, %v317_v25 }
 0x594   :  { %327 = vrot.lane.b32.xlu0 %v325_v26, %s1550_s13  ;;  %v71_v26 = vld [vmem:[%s1894_s0 + $0x30] sm:$0xff] }
 0x606   :  { %v328_v28 = vpop.permute.xlu0 %327 }
 0x607   :  { %v330_v29 = vadd.f32 %v328_v28, %v320_v27  ;;  %v72_v27 = vld [vmem:[%s1894_s0 + $0x38] sm:$0xff] }
 0x609   :  { %1355 = vtanh.f32 %v330_v29 }
 0x60f   :  { %v1356_v30 = vpop.eup %1355 }
 0x610   :  { %333 = vrot.lane.b32.xlu1 %v1356_v30, %s1549_s12 }
 0x682   :  { %v334_v32 = vpop.permute.xlu1 %333 }
 0x683   :  { %v336_v33 = vmul.f32 %v334_v32, %v317_v25  ;;  %v70_v25 = vld [vmem:[%s1894_s0 + $0x28] sm:$0xff] }
 0x684   :  { %1280 = vmatmul.msk.f32.gmra.mxu0 %vm83_vm0, %v70_v25 }
 0x685   :  { %338 = vrot.lane.b32.xlu2 %v336_v33, %s1550_s13 }
 0x68c   :  { %1281 = vmatmul.msk.f32.gmra.mxu0 %vm83_vm0, %v71_v26 }
 0x694   :  { %1282 = vmatmul.msk.f32.gmra.mxu0 %vm83_vm0, %v72_v27 }
 0x6df   :  { %v339_v34 = vpop.permute.xlu2 %338 }
 0x6e0   :  { %1288 = vmatmul.msk.f32.vlgmr.msrb.gmra.mxu1 %vm149_vm5, %v339_v34  ;;  %1300 = vmatmul.msk.f32.gmra.mxu3 %vm149_vm5, %v339_v34 }
 0x701   :  { %v140_v31 = vpop.f32.mrf.mxu0 }
 0x702   :  { %v141_v34 = vadd.f32 %v1666_v8, %v140_v31 }
 0x709   :  { %v1751_v32 = vpop.f32.mrf.mxu0 }
 0x711   :  { %v1753_v33 = vpop.f32.mrf.mxu0 }
 0x75d   :  { %v359_v37 = vpop.f32.mrf.mxu1 }
 0x75e   :  { %v362_v38 = vadd.f32 %v359_v37, %v135_v36 }
 0x760   :  { %1357 = vtanh.f32 %v362_v38  ;;  %v1289_v40 = vmul.f32 -1.442695, %v362_v38 }
 0x762   :  { %1359 = vpow2.f32 %v1289_v40 }
 0x766   :  { %v1358_v39 = vpop.eup %1357 }
 0x767   :  { %385 = vrot.lane.b32.xlu0 %v1358_v39, %s1549_s12 }
 0x768   :  { %v1360_v41 = vpop.eup %1359 }
 0x769   :  { %v366_v42 = vadd.f32 1.0, %v1360_v41 }
 0x76b   :  { %1361 = vrcp.f32 %v366_v42  ;;  %v378_v48 = vand.u32 2147483648, %v366_v42  ;;  %vm372_vm15 = vweird.f32 %v366_v42  ;;  %v376_v49 = vand.u32 2147483647, %v366_v42 }
 0x76d   :  { %v379_v51 = vor.u32 1.1754944e-38, %v378_v48  ;;  %vm377_vm2 = vcmp.eq.f32.partialorder %v376_v49, 8.507059e+37 }
 0x771   :  { %v1362_v43 = vpop.eup %1361 }
 0x772   :  { %v368_v44 = vmul.f32 %v1362_v43, %v366_v42  ;;  %vm373_vm14 = vweird.f32 %v1362_v43 }
 0x773   :  { %vm374_vm1 = vmor %vm372_vm15, %vm373_vm14 }
 0x774   :  { %v369_v45 = vsub.f32 1.0, %v368_v44 }
 0x776   :  { %v370_v46 = vmul.f32 %v1362_v43, %v369_v45 }
 0x778   :  { %v371_v47 = vadd.f32 %v1362_v43, %v370_v46 }
 0x77a   :  { %v375_v50 = vsel %vm374_vm1, %v1362_v43, %v371_v47 }
 0x77b   :  { %v380_v53 = vsel %vm377_vm2, %v379_v51, %v375_v50 }
 0x77c   :  { %v383_v55 = vmul.f32 %v380_v53, %v330_v29 }
 0x7d9   :  { %v386_v52 = vpop.permute.xlu0 %385 }
 0x7da   :  { %v388_v54 = vmul.f32 %v386_v52, %v380_v53 }
 0x7dc   :  { %390 = vrot.lane.b32.xlu1 %v388_v54, %s1550_s13 }
 0x84e   :  { %v391_v56 = vpop.permute.xlu1 %390 }
 0x84f   :  { %v393_v57 = vadd.f32 %v391_v56, %v383_v55 }
 0x851   :  { %1363 = vtanh.f32 %v393_v57 }
 0x857   :  { %v1364_v58 = vpop.eup %1363 }
 0x858   :  { %396 = vrot.lane.b32.xlu2 %v1364_v58, %s1549_s12 }
 0x8b2   :  { %v397_v59 = vpop.permute.xlu2 %396 }
 0x8b3   :  { %v399_v60 = vmul.f32 %v397_v59, %v380_v53  ;;  %v1763_v59 = vld [vmem:[#allocation2 + $0x18] sm:$0xff] }
 0x8b4   :  { %722 = vmatpush.msrb.mxu1 %v1763_v59 }
 0x8b5   :  { %401 = vrot.lane.b32.xlu0 %v399_v60, %s1550_s13  ;;  %v1765_v60 = vld [vmem:[#allocation2 + $0x10] sm:$0xff] }
 0x8b6   :  { %723 = vmatpush.msrb.mxu1 %v1765_v60 }
 0x8b8   :  { %724 = vmatpush.msrb.mxu1 %v1769_v61 }
 0x927   :  { %v402_v62 = vpop.permute.xlu0 %401 }
 0x928   :  { %1290 = vmatmul.msk.f32.vlgmr.msra.gmra.mxu2 %vm149_vm5, %v402_v62  ;;  %1301 = vmatmul.msk.f32.gmra.mxu3 %vm149_vm5, %v402_v62  ;;  %v1773_v62 = vld [vmem:[#allocation2] sm:$0xff] }
 0x929   :  { %785 = vmatpush.msra.mxu2 %v1763_v59  ;;  %725 = vmatpush.msrb.mxu1 %v1773_v62 }
 0x92b   :  { %786 = vmatpush.msra.mxu2 %v1765_v60 }
 0x92d   :  { %787 = vmatpush.msra.mxu2 %v1769_v61 }
 0x92f   :  { %788 = vmatpush.msra.mxu2 %v1773_v62 }
 0x9ab   :  { %v422_v3 = vpop.f32.mrf.mxu2 }
 0x9ac   :  { %v425_v4 = vadd.f32 %v422_v3, %v138_v1  ;;  %v144_v1 = vadd.f32 %v1666_v8, %v1751_v32 }
 0x9ae   :  { %1365 = vtanh.f32 %v425_v4  ;;  %v1291_v10 = vmul.f32 -1.442695, %v425_v4 }
 0x9b0   :  { %1367 = vpow2.f32 %v1291_v10 }
 0x9b4   :  { %v1366_v9 = vpop.eup %1365 }
 0x9b5   :  { %448 = vrot.lane.b32.xlu1 %v1366_v9, %s1549_s12  ;;  %v1795_v9 = vld [vmem:[%s1900_s6] ss:$0 sm:$0xff] }
 0x9b6   :  { %v1368_v11 = vpop.eup %1367 }
 0x9b7   :  { %v429_v12 = vadd.f32 1.0, %v1368_v11 }
 0x9b9   :  { %1369 = vrcp.f32 %v429_v12  ;;  %v441_v18 = vand.u32 2147483648, %v429_v12  ;;  %vm435_vm4 = vweird.f32 %v429_v12  ;;  %v439_v0 = vand.u32 2147483647, %v429_v12 }
 0x9bb   :  { %v442_v19 = vor.u32 1.1754944e-38, %v441_v18  ;;  %vm440_vm7 = vcmp.eq.f32.partialorder %v439_v0, 8.507059e+37 }
 0x9bf   :  { %v1370_v13 = vpop.eup %1369 }
 0x9c0   :  { %v431_v14 = vmul.f32 %v1370_v13, %v429_v12  ;;  %vm436_vm3 = vweird.f32 %v1370_v13 }
 0x9c1   :  { %vm437_vm6 = vmor %vm435_vm4, %vm436_vm3 }
 0x9c2   :  { %v432_v15 = vsub.f32 1.0, %v431_v14 }
 0x9c4   :  { %v433_v16 = vmul.f32 %v1370_v13, %v432_v15 }
 0x9c6   :  { %v434_v17 = vadd.f32 %v1370_v13, %v433_v16 }
 0x9c8   :  { %v438_v2 = vsel %vm437_vm6, %v1370_v13, %v434_v17 }
 0x9c9   :  { %v443_v20 = vsel %vm440_vm7, %v442_v19, %v438_v2 }
 0x9ca   :  { %v446_v21 = vmul.f32 %v443_v20, %v393_v57 }
 0xa27   :  { %v449_v5 = vpop.permute.xlu1 %448 }
 0xa28   :  { %v451_v6 = vmul.f32 %v449_v5, %v443_v20 }
 0xa2a   :  { %453 = vrot.lane.b32.xlu2 %v451_v6, %s1550_s13 }
 0xa84   :  { %v454_v22 = vpop.permute.xlu2 %453 }
 0xa85   :  { %v456_v23 = vadd.f32 %v454_v22, %v446_v21 }
 0xa87   :  { %1371 = vtanh.f32 %v456_v23 }
 0xa8d   :  { %v1372_v24 = vpop.eup %1371 }
 0xa8e   :  { %459 = vrot.lane.b32.xlu0 %v1372_v24, %s1549_s12 }
 0xb00   :  { %v460_v28 = vpop.permute.xlu0 %459 }
 0xb01   :  { %v462_v29 = vmul.f32 %v460_v28, %v443_v20 }
 0xb03   :  { %464 = vrot.lane.b32.xlu1 %v462_v29, %s1550_s13 }
 0xb75   :  { %v465_v30 = vpop.permute.xlu1 %464 }
 0xb76   :  { %1292 = vmatmul.msk.f32.vlgmr.msrb.gmra.mxu0 %vm149_vm5, %v465_v30  ;;  %1302 = vmatmul.msk.f32.gmra.mxu3 %vm149_vm5, %v465_v30 }
 0xbf3   :  { %v485_v35 = vpop.f32.mrf.mxu0 }
 0xbf4   :  { %v488_v36 = vadd.f32 %v485_v35, %v141_v34 }
 0xbf6   :  { %1373 = vtanh.f32 %v488_v36  ;;  %v1293_v38 = vmul.f32 -1.442695, %v488_v36 }
 0xbf8   :  { %1375 = vpow2.f32 %v1293_v38 }
 0xbfc   :  { %v1374_v37 = vpop.eup %1373 }
 0xbfd   :  { %511 = vrot.lane.b32.xlu2 %v1374_v37, %s1549_s12 }
 0xbfe   :  { %v1376_v39 = vpop.eup %1375 }
 0xbff   :  { %v492_v40 = vadd.f32 1.0, %v1376_v39 }
 0xc01   :  { %1377 = vrcp.f32 %v492_v40  ;;  %v504_v46 = vand.u32 2147483648, %v492_v40  ;;  %vm498_vm8 = vweird.f32 %v492_v40  ;;  %v502_v47 = vand.u32 2147483647, %v492_v40 }
 0xc03   :  { %v505_v49 = vor.u32 1.1754944e-38, %v504_v46  ;;  %vm503_vm10 = vcmp.eq.f32.partialorder %v502_v47, 8.507059e+37 }
 0xc07   :  { %v1378_v41 = vpop.eup %1377 }
 0xc08   :  { %v494_v42 = vmul.f32 %v1378_v41, %v492_v40  ;;  %vm499_vm0 = vweird.f32 %v1378_v41 }
 0xc09   :  { %vm500_vm9 = vmor %vm498_vm8, %vm499_vm0 }
 0xc0a   :  { %v495_v43 = vsub.f32 1.0, %v494_v42 }
 0xc0c   :  { %v496_v44 = vmul.f32 %v1378_v41, %v495_v43 }
 0xc0e   :  { %v497_v45 = vadd.f32 %v1378_v41, %v496_v44 }
 0xc10   :  { %v501_v48 = vsel %vm500_vm9, %v1378_v41, %v497_v45 }
 0xc11   :  { %v506_v51 = vsel %vm503_vm10, %v505_v49, %v501_v48 }
 0xc12   :  { %v509_v53 = vmul.f32 %v506_v51, %v456_v23 }
 0xc57   :  { %v512_v50 = vpop.permute.xlu2 %511 }
 0xc58   :  { %v514_v52 = vmul.f32 %v512_v50, %v506_v51 }
 0xc5a   :  { %516 = vrot.lane.b32.xlu0 %v514_v52, %s1550_s13 }
 0xccc   :  { %v517_v54 = vpop.permute.xlu0 %516 }
 0xccd   :  { %v1758_v55 = vadd.f32 %v517_v54, %v509_v53 }
 0xccf   :  { %1379 = vtanh.f32 %v1758_v55 }
 0xcd5   :  { %v1380_v56 = vpop.eup %1379 }
 0xcd6   :  { %522 = vrot.lane.b32.xlu1 %v1380_v56, %s1549_s12 }
 0xd48   :  { %v523_v57 = vpop.permute.xlu1 %522 }
 0xd49   :  { %v525_v58 = vmul.f32 %v523_v57, %v506_v51 }
 0xd4b   :  { %527 = vrot.lane.b32.xlu2 %v525_v58, %s1550_s13 }
 0xda5   :  { %v528_v63 = vpop.permute.xlu2 %527 }
 0xda6   :  { %1294 = vmatmul.msk.f32.vlgmr.msra.gmra.mxu1 %vm149_vm5, %v528_v63  ;;  %1303 = vmatmul.msk.f32.gmra.mxu3 %vm149_vm5, %v528_v63 }
 0xda7   :  { %848 = vmatpush.msra.mxu1 %v1763_v59 }
 0xda9   :  { %849 = vmatpush.msra.mxu1 %v1765_v60 }
 0xdab   :  { %850 = vmatpush.msra.mxu1 %v1769_v61 }
 0xdad   :  { %851 = vmatpush.msra.mxu1 %v1773_v62 }
 0xdae   :  { %726 = vmatmul.f32.vlgmr.msrb.gmra.mxu1 %v1548_v7  ;;  %v686_v7 = vpop.f32.mrf.mxu3 }
 0xdaf   :  { %974 = vmatpush.msrb.mxu1 %v1763_v59  ;;  %v687_v10 = vadd.f32 %v1795_v9, %v686_v7 }
 0xdb1   :  { %975 = vmatpush.msrb.mxu1 %v1765_v60 }
 0xdb3   :  { %976 = vmatpush.msrb.mxu1 %v1769_v61 }
 0xdb5   :  { %977 = vmatpush.msrb.mxu1 %v1773_v62 }
 0xdb6   :  { %v689_v56 = vpop.f32.mrf.mxu3 }
 0xdb7   :  { %v690_v57 = vadd.f32 %v1795_v9, %v689_v56 }
 0xe23   :  { %v548_v3 = vpop.f32.mrf.mxu1 }
 0xe24   :  { %v551_v4 = vadd.f32 %v548_v3, %v144_v1 }
 0xe26   :  { %1381 = vtanh.f32 %v551_v4  ;;  %v1295_v8 = vmul.f32 -1.442695, %v551_v4 }
 0xe2b   :  { %v727_v11 = vpop.f32.mrf.mxu1 }
 0xe2c   :  { %v1382_v12 = vpop.eup %1381  ;;  %v730_v13 = vadd.f32 %v727_v11, %v687_v10 }
 0xe2d   :  { %574 = vrot.lane.b32.xlu0 %v1382_v12, %s1549_s12 }
 0xe2e   :  { %1383 = vtanh.f32 %v730_v13  ;;  %v1306_v15 = vmul.f32 -1.442695, %v730_v13 }
 0xe2f   :  { %1385 = vpow2.f32 %v1295_v8 }
 0xe30   :  { %1387 = vpow2.f32 %v1306_v15 }
 0xe34   :  { %v1384_v14 = vpop.eup %1383 }
 0xe35   :  { %753 = vrot.lane.b32.xlu1 %v1384_v14, %s1549_s12  ;;  %v1386_v16 = vpop.eup %1385 }
 0xe36   :  { %v555_v17 = vadd.f32 1.0, %v1386_v16  ;;  %v1388_v18 = vpop.eup %1387 }
 0xe37   :  { %v734_v0 = vadd.f32 1.0, %v1388_v18 }
 0xe38   :  { %1389 = vrcp.f32 %v555_v17  ;;  %v567_v24 = vand.u32 2147483648, %v555_v17  ;;  %vm561_vm12 = vweird.f32 %v555_v17  ;;  %v565_v25 = vand.u32 2147483647, %v555_v17 }
 0xe39   :  { %1391 = vrcp.f32 %v734_v0  ;;  %v746_v34 = vand.u32 2147483648, %v734_v0  ;;  %vm740_vm1 = vweird.f32 %v734_v0  ;;  %v744_v35 = vand.u32 2147483647, %v734_v0 }
 0xe3a   :  { %v568_v28 = vor.u32 1.1754944e-38, %v567_v24  ;;  %vm566_vm14 = vcmp.eq.f32.partialorder %v565_v25, 8.507059e+37  ;;  %v692_v24 = vpop.f32.mrf.mxu3 }
 0xe3b   :  { %v747_v37 = vor.u32 1.1754944e-38, %v746_v34  ;;  %vm745_vm3 = vcmp.eq.f32.partialorder %v744_v35, 8.507059e+37  ;;  %v693_v25 = vadd.f32 %v1795_v9, %v692_v24 }
 0xe3e   :  { %v1390_v2 = vpop.eup %1389 }
 0xe3f   :  { %v557_v19 = vmul.f32 %v1390_v2, %v555_v17  ;;  %v1392_v20 = vpop.eup %1391  ;;  %vm562_vm11 = vweird.f32 %v1390_v2 }
 0xe40   :  { %v736_v21 = vmul.f32 %v1392_v20, %v734_v0  ;;  %vm563_vm13 = vmor %vm561_vm12, %vm562_vm11  ;;  %vm741_vm15 = vweird.f32 %v1392_v20 }
 0xe41   :  { %v558_v5 = vsub.f32 1.0, %v557_v19  ;;  %vm742_vm2 = vmor %vm740_vm1, %vm741_vm15 }
 0xe42   :  { %v737_v23 = vsub.f32 1.0, %v736_v21 }
 0xe43   :  { %v559_v6 = vmul.f32 %v1390_v2, %v558_v5 }
 0xe44   :  { %v738_v27 = vmul.f32 %v1392_v20, %v737_v23 }
 0xe45   :  { %v560_v22 = vadd.f32 %v1390_v2, %v559_v6 }
 0xe46   :  { %v739_v32 = vadd.f32 %v1392_v20, %v738_v27 }
 0xe47   :  { %v564_v26 = vsel %vm563_vm13, %v1390_v2, %v560_v22 }
 0xe48   :  { %v569_v30 = vsel %vm566_vm14, %v568_v28, %v564_v26  ;;  %v743_v36 = vsel %vm742_vm2, %v1392_v20, %v739_v32 }
 0xe49   :  { %v748_v39 = vsel %vm745_vm3, %v747_v37, %v743_v36  ;;  %v572_v41 = vmul.f32 %v569_v30, %v1758_v55 }
 0xe4a   :  { %v751_v45 = vmul.f32 0.0, %v748_v39 }
 0xe9f   :  { %v575_v29 = vpop.permute.xlu0 %574 }
 0xea0   :  { %v577_v31 = vmul.f32 %v575_v29, %v569_v30 }
 0xea2   :  { %579 = vrot.lane.b32.xlu2 %v577_v31, %s1550_s13 }
 0xea7   :  { %v754_v38 = vpop.permute.xlu1 %753 }
 0xea8   :  { %v756_v40 = vmul.f32 %v754_v38, %v748_v39 }
 0xeaa   :  { %758 = vrot.lane.b32.xlu0 %v756_v40, %s1550_s13 }
 0xefc   :  { %v580_v42 = vpop.permute.xlu2 %579 }
 0xefd   :  { %v1803_v43 = vadd.f32 %v580_v42, %v572_v41 }
 0xeff   :  { %1393 = vtanh.f32 %v1803_v43 }
 0xf05   :  { %v1394_v44 = vpop.eup %1393 }
 0xf06   :  { %585 = vrot.lane.b32.xlu1 %v1394_v44, %s1549_s12 }
 0xf1c   :  { %v759_v46 = vpop.permute.xlu0 %758 }
 0xf1d   :  { %v761_v47 = vadd.f32 %v759_v46, %v751_v45 }
 0xf1f   :  { %1395 = vtanh.f32 %v761_v47 }
 0xf25   :  { %v1396_v48 = vpop.eup %1395 }
 0xf26   :  { %764 = vrot.lane.b32.xlu2 %v1396_v48, %s1549_s12 }
 0xf78   :  { %v586_v49 = vpop.permute.xlu1 %585 }
 0xf79   :  { %v588_v50 = vmul.f32 %v586_v49, %v569_v30 }
 0xf7b   :  { %590 = vrot.lane.b32.xlu0 %v588_v50, %s1550_s13 }
 0xf80   :  { %v765_v51 = vpop.permute.xlu2 %764 }
 0xf81   :  { %v767_v52 = vmul.f32 %v765_v51, %v748_v39 }
 0xf83   :  { %769 = vrot.lane.b32.xlu1 %v767_v52, %s1550_s13 }
 0xfed   :  { %v591_v53 = vpop.permute.xlu0 %590 }
 0xfee   :  { %1296 = vmatmul.msk.f32.vlgmr.msrb.gmra.mxu2 %vm149_vm5, %v591_v53  ;;  %1304 = vmatmul.msk.f32.gmra.mxu3 %vm149_vm5, %v591_v53  ;;  %v695_v53 = vpop.f32.mrf.mxu3 }
 0xfef   :  { %911 = vmatpush.msrb.mxu2 %v1763_v59 }
 0xff1   :  { %912 = vmatpush.msrb.mxu2 %v1765_v60 }
 0xff3   :  { %913 = vmatpush.msrb.mxu2 %v1769_v61 }
 0xff5   :  { %v770_v54 = vpop.permute.xlu1 %769  ;;  %914 = vmatpush.msrb.mxu2 %v1773_v62 }
 0xff6   :  { %1307 = vmatmul.msk.f32.vlgmr.msra.gmra.mxu2 %vm149_vm5, %v770_v54  ;;  %v696_v54 = vadd.f32 %v1795_v9, %v695_v53 }
 0xff7   :  { %1037 = vmatpush.msra.mxu2 %v1763_v59 }
 0xff9   :  { %1038 = vmatpush.msra.mxu2 %v1765_v60 }
 0xffb   :  { %1039 = vmatpush.msra.mxu2 %v1769_v61 }
 0xffd   :  { %1040 = vmatpush.msra.mxu2 %v1773_v62 }
0x1071   :  { %v1821_v55 = vpop.f32.mrf.mxu2 }
0x1079   :  { %v790_v58 = vpop.f32.mrf.mxu2 }
0x107a   :  { %v793_v63 = vadd.f32 %v790_v58, %v690_v57 }
0x107c   :  { %1397 = vtanh.f32 %v793_v63  ;;  %v1308_v3 = vmul.f32 -1.442695, %v793_v63 }
0x107e   :  { %1399 = vpow2.f32 %v1308_v3 }
0x1082   :  { %v1398_v1 = vpop.eup %1397 }
0x1083   :  { %816 = vrot.lane.b32.xlu2 %v1398_v1, %s1549_s12 }
0x1084   :  { %v1400_v4 = vpop.eup %1399 }
0x1085   :  { %v797_v7 = vadd.f32 1.0, %v1400_v4 }
0x1087   :  { %1401 = vrcp.f32 %v797_v7  ;;  %v809_v8 = vand.u32 2147483648, %v797_v7  ;;  %vm803_vm6 = vweird.f32 %v797_v7  ;;  %v807_v15 = vand.u32 2147483647, %v797_v7 }
0x1089   :  { %v810_v17 = vor.u32 1.1754944e-38, %v809_v8  ;;  %vm808_vm0 = vcmp.eq.f32.partialorder %v807_v15, 8.507059e+37 }
0x108d   :  { %v1402_v10 = vpop.eup %1401 }
0x108e   :  { %v799_v11 = vmul.f32 %v1402_v10, %v797_v7  ;;  %vm804_vm4 = vweird.f32 %v1402_v10 }
0x108f   :  { %vm805_vm7 = vmor %vm803_vm6, %vm804_vm4 }
0x1090   :  { %v800_v12 = vsub.f32 1.0, %v799_v11 }
0x1092   :  { %v801_v13 = vmul.f32 %v1402_v10, %v800_v12 }
0x1094   :  { %v802_v14 = vadd.f32 %v1402_v10, %v801_v13 }
0x1096   :  { %v806_v16 = vsel %vm805_vm7, %v1402_v10, %v802_v14 }
0x1097   :  { %v811_v0 = vsel %vm808_vm0, %v810_v17, %v806_v16 }
0x1098   :  { %v814_v19 = vmul.f32 %v811_v0, %v761_v47 }
0x10dd   :  { %v817_v18 = vpop.permute.xlu2 %816 }
0x10de   :  { %v819_v2 = vmul.f32 %v817_v18, %v811_v0 }
0x10e0   :  { %821 = vrot.lane.b32.xlu0 %v819_v2, %s1550_s13 }
0x1152   :  { %v822_v5 = vpop.permute.xlu0 %821 }
0x1153   :  { %v824_v20 = vadd.f32 %v822_v5, %v814_v19  ;;  %v698_v5 = vpop.f32.mrf.mxu3 }
0x1155   :  { %1403 = vtanh.f32 %v824_v20 }
0x115b   :  { %v1404_v6 = vpop.eup %1403 }
0x115c   :  { %827 = vrot.lane.b32.xlu1 %v1404_v6, %s1549_s12 }
0x11ce   :  { %v828_v21 = vpop.permute.xlu1 %827 }
0x11cf   :  { %v830_v22 = vmul.f32 %v828_v21, %v811_v0 }
0x11d1   :  { %832 = vrot.lane.b32.xlu2 %v830_v22, %s1550_s13 }
0x122b   :  { %v833_v23 = vpop.permute.xlu2 %832 }
0x122c   :  { %1309 = vmatmul.msk.f32.vlgmr.msra.gmra.mxu1 %vm149_vm5, %v833_v23 }
0x122d   :  { %1100 = vmatpush.msra.mxu1 %v1763_v59 }
0x122f   :  { %1101 = vmatpush.msra.mxu1 %v1765_v60 }
0x1231   :  { %1102 = vmatpush.msra.mxu1 %v1769_v61 }
0x1233   :  { %1103 = vmatpush.msra.mxu1 %v1773_v62 }
0x12a9   :  { %v853_v26 = vpop.f32.mrf.mxu1 }
0x12aa   :  { %v856_v27 = vadd.f32 %v853_v26, %v693_v25 }
0x12ac   :  { %1405 = vtanh.f32 %v856_v27  ;;  %v1310_v29 = vmul.f32 -1.442695, %v856_v27 }
0x12ae   :  { %1407 = vpow2.f32 %v1310_v29 }
0x12b2   :  { %v1406_v28 = vpop.eup %1405 }
0x12b3   :  { %879 = vrot.lane.b32.xlu0 %v1406_v28, %s1549_s12 }
0x12b4   :  { %v1408_v30 = vpop.eup %1407 }
0x12b5   :  { %v860_v31 = vadd.f32 1.0, %v1408_v30 }
0x12b7   :  { %1409 = vrcp.f32 %v860_v31  ;;  %v872_v38 = vand.u32 2147483648, %v860_v31  ;;  %vm866_vm9 = vweird.f32 %v860_v31  ;;  %v870_v39 = vand.u32 2147483647, %v860_v31 }
0x12b9   :  { %v873_v41 = vor.u32 1.1754944e-38, %v872_v38  ;;  %vm871_vm11 = vcmp.eq.f32.partialorder %v870_v39, 8.507059e+37 }
0x12bd   :  { %v1410_v32 = vpop.eup %1409 }
0x12be   :  { %v862_v34 = vmul.f32 %v1410_v32, %v860_v31  ;;  %vm867_vm8 = vweird.f32 %v1410_v32 }
0x12bf   :  { %vm868_vm10 = vmor %vm866_vm9, %vm867_vm8 }
0x12c0   :  { %v863_v35 = vsub.f32 1.0, %v862_v34 }
0x12c2   :  { %v864_v36 = vmul.f32 %v1410_v32, %v863_v35 }
0x12c4   :  { %v865_v37 = vadd.f32 %v1410_v32, %v864_v36 }
0x12c6   :  { %v869_v40 = vsel %vm868_vm10, %v1410_v32, %v865_v37 }
0x12c7   :  { %v874_v44 = vsel %vm871_vm11, %v873_v41, %v869_v40 }
0x12c8   :  { %v877_v46 = vmul.f32 %v874_v44, %v824_v20  ;;  %v699_v20 = vadd.f32 %v1795_v9, %v698_v5 }
0x1325   :  { %v880_v42 = vpop.permute.xlu0 %879 }
0x1326   :  { %v882_v45 = vmul.f32 %v880_v42, %v874_v44 }
0x1328   :  { %884 = vrot.lane.b32.xlu1 %v882_v45, %s1550_s13 }
0x139a   :  { %v885_v47 = vpop.permute.xlu1 %884 }
0x139b   :  { %v887_v48 = vadd.f32 %v885_v47, %v877_v46  ;;  %v701_v47 = vpop.f32.mrf.mxu3 }
0x139d   :  { %1411 = vtanh.f32 %v887_v48 }
0x13a3   :  { %v1412_v49 = vpop.eup %1411 }
0x13a4   :  { %890 = vrot.lane.b32.xlu2 %v1412_v49, %s1549_s12 }
0x13fe   :  { %v891_v50 = vpop.permute.xlu2 %890 }
0x13ff   :  { %v893_v51 = vmul.f32 %v891_v50, %v874_v44 }
0x1401   :  { %895 = vrot.lane.b32.xlu0 %v893_v51, %s1550_s13 }
0x1473   :  { %v896_v52 = vpop.permute.xlu0 %895 }
0x1474   :  { %1311 = vmatmul.msk.f32.vlgmr.msrb.gmra.mxu2 %vm149_vm5, %v896_v52 }
0x1475   :  { %1163 = vmatpush.msrb.mxu2 %v1763_v59 }
0x1477   :  { %1164 = vmatpush.msrb.mxu2 %v1765_v60 }
0x1479   :  { %1165 = vmatpush.msrb.mxu2 %v1769_v61 }
0x147b   :  { %1166 = vmatpush.msrb.mxu2 %v1773_v62 }
0x14f7   :  { %v916_v56 = vpop.f32.mrf.mxu2 }
0x14f8   :  { %v919_v57 = vadd.f32 %v916_v56, %v696_v54 }
0x14fa   :  { %1413 = vtanh.f32 %v919_v57  ;;  %v1312_v63 = vmul.f32 -1.442695, %v919_v57 }
0x14fc   :  { %1415 = vpow2.f32 %v1312_v63 }
0x1500   :  { %v1414_v58 = vpop.eup %1413 }
0x1501   :  { %942 = vrot.lane.b32.xlu1 %v1414_v58, %s1549_s12 }
0x1502   :  { %v1416_v1 = vpop.eup %1415 }
0x1503   :  { %v923_v3 = vadd.f32 1.0, %v1416_v1 }
0x1505   :  { %1417 = vrcp.f32 %v923_v3  ;;  %v935_v62 = vand.u32 2147483648, %v923_v3  ;;  %vm929_vm13 = vweird.f32 %v923_v3  ;;  %v933_v10 = vand.u32 2147483647, %v923_v3 }
0x1507   :  { %v936_v12 = vor.u32 1.1754944e-38, %v935_v62  ;;  %vm934_vm15 = vcmp.eq.f32.partialorder %v933_v10, 8.507059e+37 }
0x150b   :  { %v1418_v59 = vpop.eup %1417 }
0x150c   :  { %v925_v60 = vmul.f32 %v1418_v59, %v923_v3  ;;  %vm930_vm12 = vweird.f32 %v1418_v59 }
0x150d   :  { %vm931_vm14 = vmor %vm929_vm13, %vm930_vm12 }
0x150e   :  { %v926_v4 = vsub.f32 1.0, %v925_v60 }
0x1510   :  { %v927_v61 = vmul.f32 %v1418_v59, %v926_v4  ;;  %v1465_v4 = vld [vmem:[%s1897_s3] ss:$0 sm:$0xff] }
0x1512   :  { %v928_v7 = vadd.f32 %v1418_v59, %v927_v61  ;;  %v147_v61 = vadd.f32 %v1465_v4, %v1753_v33 }
0x1514   :  { %v932_v11 = vsel %vm931_vm14, %v1418_v59, %v928_v7  ;;  %v614_v62 = vadd.f32 %v1821_v55, %v147_v61 }
0x1515   :  { %v937_v14 = vsel %vm934_vm15, %v936_v12, %v932_v11 }
0x1516   :  { %v940_v15 = vmul.f32 %v937_v14, %v887_v48  ;;  %v702_v48 = vadd.f32 %v1795_v9, %v701_v47 }
0x1573   :  { %v943_v13 = vpop.permute.xlu1 %942 }
0x1574   :  { %v945_v8 = vmul.f32 %v943_v13, %v937_v14 }
0x1576   :  { %947 = vrot.lane.b32.xlu2 %v945_v8, %s1550_s13 }
0x15d0   :  { %v948_v16 = vpop.permute.xlu2 %947 }
0x15d1   :  { %v950_v17 = vadd.f32 %v948_v16, %v940_v15  ;;  %v1297_v16 = vmul.f32 -1.442695, %v614_v62 }
0x15d3   :  { %1419 = vtanh.f32 %v950_v17 }
0x15d9   :  { %v1420_v18 = vpop.eup %1419 }
0x15da   :  { %953 = vrot.lane.b32.xlu0 %v1420_v18, %s1549_s12 }
0x164c   :  { %v954_v0 = vpop.permute.xlu0 %953 }
0x164d   :  { %v956_v2 = vmul.f32 %v954_v0, %v937_v14 }
0x164f   :  { %958 = vrot.lane.b32.xlu1 %v956_v2, %s1550_s13 }
0x16c1   :  { %v959_v19 = vpop.permute.xlu1 %958 }
0x16c2   :  { %1313 = vmatmul.msk.f32.vlgmr.msrb.gmra.mxu1 %vm149_vm5, %v959_v19 }
0x173f   :  { %v979_v6 = vpop.f32.mrf.mxu1 }
0x1740   :  { %v982_v21 = vadd.f32 %v979_v6, %v699_v20 }
0x1742   :  { %1421 = vtanh.f32 %v982_v21  ;;  %v1314_v23 = vmul.f32 -1.442695, %v982_v21 }
0x1744   :  { %1423 = vpow2.f32 %v1314_v23 }
0x1748   :  { %v1422_v22 = vpop.eup %1421 }
0x1749   :  { %1005 = vrot.lane.b32.xlu2 %v1422_v22, %s1549_s12 }
0x174a   :  { %v1424_v24 = vpop.eup %1423 }
0x174b   :  { %v986_v25 = vadd.f32 1.0, %v1424_v24 }
0x174d   :  { %1425 = vrcp.f32 %v986_v25  ;;  %v998_v31 = vand.u32 2147483648, %v986_v25  ;;  %vm992_vm2 = vweird.f32 %v986_v25  ;;  %v996_v32 = vand.u32 2147483647, %v986_v25 }
0x174f   :  { %v999_v35 = vor.u32 1.1754944e-38, %v998_v31  ;;  %vm997_vm4 = vcmp.eq.f32.partialorder %v996_v32, 8.507059e+37 }
0x1753   :  { %v1426_v26 = vpop.eup %1425 }
0x1754   :  { %v988_v27 = vmul.f32 %v1426_v26, %v986_v25  ;;  %vm993_vm1 = vweird.f32 %v1426_v26 }
0x1755   :  { %vm994_vm3 = vmor %vm992_vm2, %vm993_vm1 }
0x1756   :  { %v989_v28 = vsub.f32 1.0, %v988_v27 }
0x1758   :  { %v990_v29 = vmul.f32 %v1426_v26, %v989_v28 }
0x175a   :  { %v991_v30 = vadd.f32 %v1426_v26, %v990_v29  ;;  %v704_v29 = vpop.f32.mrf.mxu3 }
0x175c   :  { %v995_v34 = vsel %vm994_vm3, %v1426_v26, %v991_v30  ;;  %v705_v30 = vadd.f32 %v1795_v9, %v704_v29 }
0x175d   :  { %v1000_v37 = vsel %vm997_vm4, %v999_v35, %v995_v34 }
0x175e   :  { %v1003_v39 = vmul.f32 %v1000_v37, %v950_v17 }
0x17a3   :  { %v1006_v36 = vpop.permute.xlu2 %1005 }
0x17a4   :  { %v1008_v38 = vmul.f32 %v1006_v36, %v1000_v37 }
0x17a6   :  { %1010 = vrot.lane.b32.xlu0 %v1008_v38, %s1550_s13 }
0x1818   :  { %v1011_v40 = vpop.permute.xlu0 %1010 }
0x1819   :  { %v1013_v41 = vadd.f32 %v1011_v40, %v1003_v39 }
0x181b   :  { %1427 = vtanh.f32 %v1013_v41 }
0x1821   :  { %v1428_v42 = vpop.eup %1427 }
0x1822   :  { %1016 = vrot.lane.b32.xlu1 %v1428_v42, %s1549_s12 }
0x1894   :  { %v1017_v44 = vpop.permute.xlu1 %1016 }
0x1895   :  { %v1019_v45 = vmul.f32 %v1017_v44, %v1000_v37 }
0x1897   :  { %1021 = vrot.lane.b32.xlu2 %v1019_v45, %s1550_s13 }
0x18f1   :  { %v1022_v46 = vpop.permute.xlu2 %1021 }
0x18f2   :  { %1315 = vmatmul.msk.f32.vlgmr.msra.gmra.mxu2 %vm149_vm5, %v1022_v46 }
0x1975   :  { %v1042_v49 = vpop.f32.mrf.mxu2 }
0x1976   :  { %v1045_v50 = vadd.f32 %v1042_v49, %v702_v48 }
0x1978   :  { %1429 = vtanh.f32 %v1045_v50  ;;  %v1316_v52 = vmul.f32 -1.442695, %v1045_v50 }
0x197a   :  { %1431 = vpow2.f32 %v1316_v52 }
0x197e   :  { %v1430_v51 = vpop.eup %1429 }
0x197f   :  { %1068 = vrot.lane.b32.xlu0 %v1430_v51, %s1549_s12 }
0x1980   :  { %v1432_v53 = vpop.eup %1431 }
0x1981   :  { %v1049_v54 = vadd.f32 1.0, %v1432_v53 }
0x1983   :  { %1433 = vrcp.f32 %v1049_v54  ;;  %v1061_v3 = vand.u32 2147483648, %v1049_v54  ;;  %vm1055_vm7 = vweird.f32 %v1049_v54  ;;  %v1059_v59 = vand.u32 2147483647, %v1049_v54 }
0x1984   :  { %1435 = vtanh.f32 %v614_v62 }
0x1985   :  { %v1062_v7 = vor.u32 1.1754944e-38, %v1061_v3  ;;  %vm1060_vm8 = vcmp.eq.f32.partialorder %v1059_v59, 8.507059e+37 }
0x1989   :  { %v1434_v56 = vpop.eup %1433 }
0x198a   :  { %v1051_v57 = vmul.f32 %v1434_v56, %v1049_v54  ;;  %vm1056_vm6 = vweird.f32 %v1434_v56  ;;  %v1436_v13 = vpop.eup %1435 }
0x198b   :  { %vm1057_vm0 = vmor %vm1055_vm7, %vm1056_vm6 }
0x198c   :  { %v1052_v58 = vsub.f32 1.0, %v1051_v57 }
0x198e   :  { %v1053_v63 = vmul.f32 %v1434_v56, %v1052_v58 }
0x1990   :  { %v1054_v1 = vadd.f32 %v1434_v56, %v1053_v63 }
0x1992   :  { %v1058_v60 = vsel %vm1057_vm0, %v1434_v56, %v1054_v1 }
0x1993   :  { %v1063_v11 = vsel %vm1060_vm8, %v1062_v7, %v1058_v60 }
0x1994   :  { %v1066_v14 = vmul.f32 %v1063_v11, %v1013_v41 }
0x19f1   :  { %v1069_v10 = vpop.permute.xlu0 %1068 }
0x19f2   :  { %v1071_v12 = vmul.f32 %v1069_v10, %v1063_v11 }
0x19f4   :  { %1073 = vrot.lane.b32.xlu1 %v1071_v12, %s1550_s13 }
0x19fc   :  { %637 = vrot.lane.b32.xlu1 %v1436_v13, %s1549_s12 }
0x1a66   :  { %v1074_v8 = vpop.permute.xlu1 %1073 }
0x1a67   :  { %v1864_v15 = vadd.f32 %v1074_v8, %v1066_v14 }
0x1a69   :  { %1437 = vtanh.f32 %v1864_v15 }
0x1a6a   :  { %1439 = vpow2.f32 %v1297_v16 }
0x1a6e   :  { %v638_v25 = vpop.permute.xlu1 %637 }
0x1a6f   :  { %v1438_v33 = vpop.eup %1437 }
0x1a70   :  { %1079 = vrot.lane.b32.xlu2 %v1438_v33, %s1549_s12  ;;  %v1440_v55 = vpop.eup %1439 }
0x1a71   :  { %v618_v17 = vadd.f32 1.0, %v1440_v55 }
0x1a73   :  { %1441 = vrcp.f32 %v618_v17  ;;  %v630_v21 = vand.u32 2147483648, %v618_v17  ;;  %vm624_vm10 = vweird.f32 %v618_v17  ;;  %v628_v22 = vand.u32 2147483647, %v618_v17 }
0x1a75   :  { %v631_v24 = vor.u32 1.1754944e-38, %v630_v21  ;;  %vm629_vm12 = vcmp.eq.f32.partialorder %v628_v22, 8.507059e+37 }
0x1a79   :  { %v1442_v18 = vpop.eup %1441 }
0x1a7a   :  { %v620_v0 = vmul.f32 %v1442_v18, %v618_v17  ;;  %vm625_vm9 = vweird.f32 %v1442_v18 }
0x1a7b   :  { %vm626_vm11 = vmor %vm624_vm10, %vm625_vm9 }
0x1a7c   :  { %v621_v2 = vsub.f32 1.0, %v620_v0 }
0x1a7e   :  { %v622_v19 = vmul.f32 %v1442_v18, %v621_v2 }
0x1a80   :  { %v623_v20 = vadd.f32 %v1442_v18, %v622_v19 }
0x1a82   :  { %v627_v23 = vsel %vm626_vm11, %v1442_v18, %v623_v20 }
0x1a83   :  { %v632_v26 = vsel %vm629_vm12, %v631_v24, %v627_v23  ;;  %v1212_v23 = vld [vmem:[#allocation5 + $0x18] sm:$0xff]  ;;  %v1211_v24 = vld [vmem:[#allocation5 + $0x10] sm:$0xff] }
0x1a84   :  { %v640_v27 = vmul.f32 %v638_v25, %v632_v26  ;;  %v635_v35 = vmul.f32 %v632_v26, %v1803_v43  ;;  %1234 = vmatpush.msrb.mxu1 %v1212_v23  ;;  %v1210_v25 = vld [vmem:[#allocation5 + $0x8] sm:$0xff] }
0x1a86   :  { %1235 = vmatpush.msrb.mxu1 %v1211_v24 }
0x1a88   :  { %1236 = vmatpush.msrb.mxu1 %v1210_v25 }
0x1aca   :  { %v1080_v5 = vpop.permute.xlu2 %1079 }
0x1acb   :  { %v1082_v6 = vmul.f32 %v1080_v5, %v1063_v11 }
0x1acd   :  { %1084 = vrot.lane.b32.xlu0 %v1082_v6, %s1550_s13 }
0x1ad5   :  { %642 = vrot.lane.b32.xlu0 %v640_v27, %s1550_s13 }
0x1b3f   :  { %v1085_v28 = vpop.permute.xlu0 %1084 }
0x1b40   :  { %1317 = vmatmul.msk.f32.vlgmr.msra.gmra.mxu1 %vm149_vm5, %v1085_v28 }
0x1b47   :  { %v643_v34 = vpop.permute.xlu0 %642 }
0x1b48   :  { %v645_v36 = vadd.f32 %v643_v34, %v635_v35 }
0x1bbd   :  { %v1105_v31 = vpop.f32.mrf.mxu1 }
0x1bbe   :  { %v1108_v32 = vadd.f32 %v1105_v31, %v705_v30  ;;  %v1242_v30 = vlaneseq }
0x1bc0   :  { %1443 = vtanh.f32 %v1108_v32  ;;  %v1318_v39 = vmul.f32 -1.442695, %v1108_v32  ;;  %v1243_v31 = vand.u32 127, %v1242_v30  ;;  %v1332_v32 = vld [vmem:[%s1902_s8] ss:$0 sm:$0xff]  ;;  %s1264_s8 = sshll.u32 %s1903_s9, 4  ;;  %s1265_s8 = int_to_ptr.hbm [resolvable:$true] %s1264_s8 }
0x1bc1   :  { %1445 = vtanh.f32 %v645_v36 }
0x1bc2   :  { %1447 = vpow2.f32 %v1318_v39  ;;  %vm1244_vm7 = vcmp.lt.s32.totalorder %v1243_v31, 8 }
0x1bc6   :  { %v1444_v37 = vpop.eup %1443 }
0x1bc7   :  { %1131 = vrot.lane.b32.xlu2 %v1444_v37, %s1549_s12  ;;  %v1446_v38 = vpop.eup %1445 }
0x1bc8   :  { %v1448_v40 = vpop.eup %1447 }
0x1bc9   :  { %v1112_v41 = vadd.f32 1.0, %v1448_v40 }
0x1bcb   :  { %1449 = vrcp.f32 %v1112_v41  ;;  %v1124_v43 = vand.u32 2147483648, %v1112_v41  ;;  %vm1118_vm14 = vweird.f32 %v1112_v41  ;;  %v1122_v48 = vand.u32 2147483647, %v1112_v41 }
0x1bcd   :  { %v1125_v50 = vor.u32 1.1754944e-38, %v1124_v43  ;;  %vm1123_vm1 = vcmp.eq.f32.partialorder %v1122_v48, 8.507059e+37 }
0x1bcf   :  { %648 = vrot.lane.b32.xlu2 %v1446_v38, %s1549_s12 }
0x1bd1   :  { %v1450_v42 = vpop.eup %1449 }
0x1bd2   :  { %v1114_v44 = vmul.f32 %v1450_v42, %v1112_v41  ;;  %vm1119_vm13 = vweird.f32 %v1450_v42 }
0x1bd3   :  { %vm1120_vm15 = vmor %vm1118_vm14, %vm1119_vm13 }
0x1bd4   :  { %v1115_v45 = vsub.f32 1.0, %v1114_v44 }
0x1bd6   :  { %v1116_v46 = vmul.f32 %v1450_v42, %v1115_v45 }
0x1bd8   :  { %v1117_v47 = vadd.f32 %v1450_v42, %v1116_v46 }
0x1bda   :  { %v1121_v49 = vsel %vm1120_vm15, %v1450_v42, %v1117_v47 }
0x1bdb   :  { %v1126_v52 = vsel %vm1123_vm1, %v1125_v50, %v1121_v49 }
0x1bdc   :  { %v1129_v57 = vmul.f32 %v1126_v52, %v1864_v15 }
0x1c21   :  { %v1132_v51 = vpop.permute.xlu2 %1131 }
0x1c22   :  { %v1134_v53 = vmul.f32 %v1132_v51, %v1126_v52 }
0x1c24   :  { %1136 = vrot.lane.b32.xlu1 %v1134_v53, %s1550_s13 }
0x1c29   :  { %v649_v54 = vpop.permute.xlu2 %648 }
0x1c2a   :  { %v651_v56 = vmul.f32 %v649_v54, %v632_v26  ;;  %v1209_v26 = vld [vmem:[#allocation5] sm:$0xff] }
0x1c2b   :  { %1237 = vmatpush.msrb.mxu1 %v1209_v26 }
0x1c2c   :  { %665 = vrot.lane.b32.xlu1 %v651_v56, %s1550_s13 }
0x1c96   :  { %v1137_v58 = vpop.permute.xlu1 %1136 }
0x1c97   :  { %v1139_v63 = vadd.f32 %v1137_v58, %v1129_v57 }
0x1c99   :  { %1451 = vtanh.f32 %v1139_v63 }
0x1c9e   :  { %v666_v1 = vpop.permute.xlu1 %665 }
0x1c9f   :  { %v1452_v3 = vpop.eup %1451  ;;  %1305 = vmatmul.msk.f32.gmra.mxu3 %vm149_vm5, %v666_v1 }
0x1ca0   :  { %1142 = vrot.lane.b32.xlu0 %v1452_v3, %s1549_s12 }
0x1d12   :  { %v1143_v59 = vpop.permute.xlu0 %1142 }
0x1d13   :  { %v1145_v60 = vmul.f32 %v1143_v59, %v1126_v52 }
0x1d15   :  { %1147 = vrot.lane.b32.xlu2 %v1145_v60, %s1550_s13 }
0x1d22   :  { %v707_v61 = vpop.f32.mrf.mxu3 }
0x1d23   :  { %v708_v7 = vadd.f32 %v1795_v9, %v707_v61 }
0x1d6f   :  { %v1148_v4 = vpop.permute.xlu2 %1147 }
0x1d70   :  { %1319 = vmatmul.msk.f32.vlgmr.msrb.gmra.mxu2 %vm149_vm5, %v1148_v4 }
0x1df3   :  { %v1168_v62 = vpop.f32.mrf.mxu2 }
0x1df4   :  { %v1171_v10 = vadd.f32 %v1168_v62, %v708_v7 }
0x1df6   :  { %1453 = vtanh.f32 %v1171_v10  ;;  %v1320_v12 = vmul.f32 -1.442695, %v1171_v10 }
0x1df8   :  { %1455 = vpow2.f32 %v1320_v12 }
0x1dfc   :  { %v1454_v11 = vpop.eup %1453 }
0x1dfd   :  { %1194 = vrot.lane.b32.xlu0 %v1454_v11, %s1549_s12 }
0x1dfe   :  { %v1456_v13 = vpop.eup %1455 }
0x1dff   :  { %v1175_v14 = vadd.f32 1.0, %v1456_v13 }
0x1e01   :  { %1457 = vrcp.f32 %v1175_v14  ;;  %v1187_v17 = vand.u32 2147483648, %v1175_v14  ;;  %vm1181_vm3 = vweird.f32 %v1175_v14  ;;  %v1185_v9 = vand.u32 2147483647, %v1175_v14 }
0x1e03   :  { %v1188_v0 = vor.u32 1.1754944e-38, %v1187_v17  ;;  %vm1186_vm6 = vcmp.eq.f32.partialorder %v1185_v9, 8.507059e+37 }
0x1e07   :  { %v1458_v8 = vpop.eup %1457 }
0x1e08   :  { %v1177_v15 = vmul.f32 %v1458_v8, %v1175_v14  ;;  %vm1182_vm2 = vweird.f32 %v1458_v8 }
0x1e09   :  { %vm1183_vm4 = vmor %vm1181_vm3, %vm1182_vm2 }
0x1e0a   :  { %v1178_v33 = vsub.f32 1.0, %v1177_v15 }
0x1e0c   :  { %v1179_v16 = vmul.f32 %v1458_v8, %v1178_v33 }
0x1e0e   :  { %v1180_v55 = vadd.f32 %v1458_v8, %v1179_v16 }
0x1e10   :  { %v1184_v18 = vsel %vm1183_vm4, %v1458_v8, %v1180_v55 }
0x1e11   :  { %v1189_v19 = vsel %vm1186_vm6, %v1188_v0, %v1184_v18 }
0x1e12   :  { %v1192_v20 = vmul.f32 %v1189_v19, %v1139_v63 }
0x1e6f   :  { %v1195_v2 = vpop.permute.xlu0 %1194 }
0x1e70   :  { %v1197_v5 = vmul.f32 %v1195_v2, %v1189_v19 }
0x1e72   :  { %1199 = vrot.lane.b32.xlu1 %v1197_v5, %s1550_s13 }
0x1ee4   :  { %v1200_v6 = vpop.permute.xlu1 %1199 }
0x1ee5   :  { %v1202_v21 = vadd.f32 %v1200_v6, %v1192_v20 }
0x1ee7   :  { %1459 = vtanh.f32 %v1202_v21 }
0x1eed   :  { %v1460_v22 = vpop.eup %1459 }
0x1eee   :  { %1205 = vrot.lane.b32.xlu2 %v1460_v22, %s1549_s12  ;;  %s1551_s12 = smov [#allocation7]  }
0x1f48   :  { %v1206_v27 = vpop.permute.xlu2 %1205 }
0x1f49   :  { %v1208_v28 = vmul.f32 %v1206_v27, %v1189_v19 }
0x1f4b   :  { %1218 = vrot.lane.b32.xlu0 %v1208_v28, %s1550_s13  ;;  %s1262_s13 = sshll.u32 %s1551_s12, 4  ;;  %s1263_s13 = int_to_ptr.vmem [resolvable:$true] %s1262_s13 }
0x1fbd   :  { %v1219_v29 = vpop.permute.xlu0 %1218 }
0x1fbe   :  { %1321 = vmatmul.msk.f32.vlgmr.msrb.gmra.mxu1 %vm149_vm5, %v1219_v29 }
0x203b   :  { %v1239_v34 = vpop.f32.mrf.mxu1 }
0x203c   :  { %v1240_v35 = vadd.f32 %v1332_v32, %v1239_v34 }
0x203e   :  { %v1245_v36 = vsel %vm1244_vm7, %v1240_v35, -1e+30 }
0x203f   :  { %1246 = vmax.xlane.f32.xlu1 %v1245_v36 }
0x20b2   :  { %v1247_v37 = vpop.xlane.xlu1 %1246 }
0x20b3   :  { %v1248_v38 = vsub.f32 %v1245_v36, %v1247_v37 }
0x20b5   :  { %v1249_v39 = vmul.f32 1.442695, %v1248_v38 }
0x20b7   :  { %1461 = vpow2.f32 %v1249_v39 }
0x20bd   :  { %v1462_v40 = vpop.eup %1461 }
0x20be   :  { %1251 = vadd.xlane.f32.xlu2 %v1462_v40 }
0x2131   :  { %v1252_v41 = vpop.xlane.xlu2 %1251 }
0x2132   :  { %1463 = vlog2.f32 %v1252_v41 }
0x2138   :  { %v1464_v42 = vpop.eup %1463 }
0x2139   :  { %v1254_v44 = vmul.f32 0.6931472, %v1464_v42 }
0x213b   :  { %v1255_v45 = vsub.f32 %v1248_v38, %v1254_v44 }
0x213d   :  { %1256 = vst [vmem:[#allocation7] sm:$0xff] %v1255_v45 }
0x213e   :  { %1267 = dma.vmem_to_hbm [thread:$0]  %s1263_s13, 128, %s1265_s8, [#allocation4]  }
0x213f   :  { %1542 = dma.done.wait [#allocation4], 128  }
0x2140   :  { %1543 = vsyncadd [#allocation4], 4294967168 }
0x2141   :  { %1272 = vsyncpa [#allocation3], 1 }
0x2142   :  { %1273 = vsyncpa [#allocation6], 1 }
0x2143   :  { %1274 = vsyncpa [#allocation4], 1 }

</bundles_post_ra>
